<compile_context>
chip_gen: v5e
topology: v5e:2x2
jax: 0.10.0
libtpu: 0.0.40
codegen_flags: <defaults>
</compile_context>

<pallas_src>
import functools

import jax
import jax.numpy as jnp
from jax import lax
from jax.experimental import pallas as pl
from jax.experimental.pallas import tpu as pltpu


# ---------------------------------------------------------------------------
# In-kernel helpers
# ---------------------------------------------------------------------------
def _layernorm(x, gamma, beta, eps=1e-5):
    # One-pass stats: both lane reductions read x directly (co-issue on XLU).
    mu = jnp.mean(x, axis=-1, keepdims=True)
    msq = jnp.mean(x * x, axis=-1, keepdims=True)
    var = msq - mu * mu
    return (x - mu) * lax.rsqrt(var + eps) * gamma + beta


# ---------------------------------------------------------------------------
# Fused encoder kernel: one batch element per grid step.
#   w_ref  : (L, 7, D, D)  bf16   [wq, wk, wv, w1a, w1b, w2a, w2b]
#   b_ref  : (L, 10, 1, D) f32    [bq, bk, bv, b1a, b1b, b2, g1, beta1, g2, beta2]
#   mask   : (H*Lk, D)     f32    block-diagonal 0/1 head mask
# ---------------------------------------------------------------------------
def encoder_kernel(x_ref, pin_ref, w_ref, b_ref, mask_ref, pout_ref, o_ref,
                   *, nhead, n_q):
    f32, bf16 = jnp.float32, jnp.bfloat16
    num_layers = w_ref.shape[0]
    D = w_ref.shape[-1]
    hd = D // nhead
    scale = 1.0 / (hd ** 0.5)

    x = x_ref[0]                                    # (Lq+Lk, T) f32
    pin = pin_ref[...]                              # (T+1, D)  f32  [W_in ; b_in]
    mask = mask_ref[...]                            # (H*Lk, D) f32

    # --- fused input projection (f32, outside autocast in the PyTorch module) ---
    proj = jnp.dot(x, pin[:-1], preferred_element_type=f32) + pin[-1:]
    q = proj[:n_q]                                  # (Lq, D) running activation
    kv_bf = proj[n_q:].astype(bf16)                 # (Lk, D) cast once, reused per layer

    for l in range(num_layers):                     # static unroll (2 layers)
        q_bf = q.astype(bf16)
        # q/k/v projections: bf16 MXU, f32 accumulation, f32 bias.
        qp = jnp.dot(q_bf, w_ref[l, 0], preferred_element_type=f32) + b_ref[l, 0]
        k = jnp.dot(kv_bf, w_ref[l, 1], preferred_element_type=f32) + b_ref[l, 1]
        v = jnp.dot(kv_bf, w_ref[l, 2], preferred_element_type=f32) + b_ref[l, 2]

        # --- head-fused attention: no per-head slices / stacks / transposes ---
        # Replicate k and v H times along sublanes and zero the off-head feature
        # columns; a single MXU issue then yields all-head scores / the merged
        # context directly in the (Lq, D) layout.
        qs = (qp * scale).astype(bf16)                       # fold 1/sqrt(hd) into q
        k_rep = (jnp.concatenate([k] * nhead, axis=0) * mask).astype(bf16)
        v_rep = (jnp.concatenate([v] * nhead, axis=0) * mask).astype(bf16)

        s = lax.dot_general(qs, k_rep, (((1,), (1,)), ((), ())),
                            preferred_element_type=f32)      # (Lq, H*Lk)
        # Global per-row max: softmax is shift-invariant within each head segment.
        s = s - jnp.max(s, axis=-1, keepdims=True)
        p = jnp.exp(s)                                        # (Lq, H*Lk) f32
        # Per-head denominator, broadcast to (Lq, D) through the same 0/1 mask.
        denom = jnp.dot(p, mask, preferred_element_type=f32)  # (Lq, D)
        ctx = jnp.dot(p.astype(bf16), v_rep, preferred_element_type=f32)
        attn = ctx / denom                                    # exact divide

        # attn_dropout / ffn dropout: identity (eval mode).
        # TODO(synk): train-mode dropout would need pltpu.prng_seed/prng_random_bits.
        y = _layernorm(q + attn, b_ref[l, 6], b_ref[l, 7])

        # --- FFN (D -> 2D -> D), split into (D,D) halves: uniform weight blocks,
        #     no lane slices of a (·, 2D) activation ---
        y_bf = y.astype(bf16)
        h1a = jnp.maximum(
            jnp.dot(y_bf, w_ref[l, 3], preferred_element_type=f32) + b_ref[l, 3], 0.0)
        h1b = jnp.maximum(
            jnp.dot(y_bf, w_ref[l, 4], preferred_element_type=f32) + b_ref[l, 4], 0.0)
        h2 = (jnp.dot(h1a.astype(bf16), w_ref[l, 5], preferred_element_type=f32)
              + jnp.dot(h1b.astype(bf16), w_ref[l, 6], preferred_element_type=f32)
              + b_ref[l, 5])
        q = _layernorm(y + h2, b_ref[l, 8], b_ref[l, 9])

    # --- output projection (f32, outside autocast) ---
    pout = pout_ref[...]                             # (D+1, Dout)  [W_out ; b_out]
    o_ref[0] = jnp.dot(q, pout[:-1], preferred_element_type=f32) + pout[-1:]


# ---------------------------------------------------------------------------
# Wrapper: one fused pallas_call for the whole encoder
# ---------------------------------------------------------------------------
def cross_attention_encoder(x_i, x_j, params, *, token_encoder_dim, nhead):
    B = x_i.shape[0]
    Li = x_i.shape[1] // token_encoder_dim
    Lj = x_j.shape[1] // token_encoder_dim
    xi = x_i.reshape(B, Li, token_encoder_dim)
    xj = x_j.reshape(B, Lj, token_encoder_dim)
    x_all = jnp.concatenate([xi, xj], axis=1)        # (B, Li+Lj, T): one activation input

    w_slab = params["w_slab"]                        # (L, 7, D, D) bf16
    b_slab = params["b_slab"]                        # (L, 10, 1, D) f32
    pin = params["pin"]                              # (T+1, D) f32
    pout = params["pout"]                            # (D+1, Dout) f32
    D = w_slab.shape[-1]
    Dout = pout.shape[-1]
    hd = D // nhead

    # Block-diagonal head mask: mask[c, d] = 1 iff key row c (= h*Lj + j) and
    # feature column d belong to the same head.  Built once on the host.
    mask = (jnp.arange(nhead * Lj)[:, None] // Lj
            == jnp.arange(D)[None, :] // hd).astype(jnp.float32)

    def bcast(arr):                                  # full-array block, same every step
        nd = arr.ndim
        return pl.BlockSpec(arr.shape, lambda b, _nd=nd: (0,) * _nd)

    kern = functools.partial(encoder_kernel, nhead=nhead, n_q=Li)
    out = pl.pallas_call(
        kern,
        out_shape=jax.ShapeDtypeStruct((B, Li, Dout), jnp.float32),
        grid=(B,),
        in_specs=[
            pl.BlockSpec((1, Li + Lj, token_encoder_dim), lambda b: (b, 0, 0)),
            bcast(pin), bcast(w_slab), bcast(b_slab), bcast(mask), bcast(pout),
        ],
        out_specs=pl.BlockSpec((1, Li, Dout), lambda b: (b, 0, 0)),
        compiler_params=pltpu.CompilerParams(
            # "parallel" puts the two batch elements on the two v7x TensorCores;
            # on single-TC v5e/v6e it is a cheap 2-step serial loop.
            dimension_semantics=("parallel",),
            # Resident bf16 weights are ~14*D^2*num_layers bytes (double-buffered);
            # 32 MiB leaves headroom even against v7x's 64 MiB VMEM.  For large D
            # single-buffer the constant weight blocks / K-tile the FFN instead.
            vmem_limit_bytes=32 * 1024 * 1024),
    )(x_all, pin, w_slab, b_slab, mask, pout)
    return out.reshape(B, -1)                        # == torch flatten(start_dim=1)


# ---------------------------------------------------------------------------
# Parameter init (deterministic, PyTorch-like; LayerNorm = ones/zeros), packed
# into the slabs the kernel expects.
# ---------------------------------------------------------------------------
def _init_linear(key, din, dout):
    kw, kb = jax.random.split(key)
    bound = 1.0 / (din ** 0.5)
    w = jax.random.uniform(kw, (din, dout), jnp.float32, -bound, bound)
    b = jax.random.uniform(kb, (1, dout), jnp.float32, -bound, bound)
    return w, b


def init_params(key, token_encoder_dim, d_model, output_dim, num_layers):
    keys = jax.random.split(key, 2 + 4 * num_layers)
    in_w, in_b = _init_linear(keys[0], token_encoder_dim, d_model)
    out_w, out_b = _init_linear(keys[1], d_model, output_dim)
    D = d_model

    w_blocks, b_blocks = [], []
    ones = jnp.ones((1, D), jnp.float32)
    zeros = jnp.zeros((1, D), jnp.float32)
    for i in range(num_layers):
        k0, k1, k2, k3 = keys[2 + 4 * i: 2 + 4 * (i + 1)]
        wq, bq = _init_linear(k0, D, D)
        wkv, bkv = _init_linear(k1, D, 2 * D)        # kv_proj; chunk(2) -> k, v
        w1, b1 = _init_linear(k2, D, 2 * D)
        w2, b2 = _init_linear(k3, 2 * D, D)
        wk, wv = wkv[:, :D], wkv[:, D:]
        bk, bv = bkv[:, :D], bkv[:, D:]
        w1a, w1b = w1[:, :D], w1[:, D:]              # column split of (D, 2D)
        b1a, b1b = b1[:, :D], b1[:, D:]
        w2a, w2b = w2[:D, :], w2[D:, :]              # row split of (2D, D)
        w_blocks.append(jnp.stack([wq, wk, wv, w1a, w1b, w2a, w2b], axis=0))
        b_blocks.append(jnp.stack([bq, bk, bv, b1a, b1b, b2,
                                   ones, zeros, ones, zeros], axis=0))

    return dict(
        w_slab=jnp.stack(w_blocks, axis=0).astype(jnp.bfloat16),   # (L, 7, D, D)
        b_slab=jnp.stack(b_blocks, axis=0),                        # (L, 10, 1, D)
        pin=jnp.concatenate([in_w, in_b], axis=0),                 # (T+1, D)
        pout=jnp.concatenate([out_w, out_b], axis=0),              # (D+1, Dout)
    )


if __name__ == "__main__":
    B = 2
    TOKEN_ENCODER_DIM = 16
    D_MODEL = 32
    OUTPUT_DIM = 16
    NHEAD = 4
    NUM_LAYERS = 2
    L_I, L_J = 8, 8

    key = jax.random.PRNGKey(0)
    k_params, k_xi, k_xj = jax.random.split(key, 3)
    params = init_params(k_params, TOKEN_ENCODER_DIM, D_MODEL, OUTPUT_DIM, NUM_LAYERS)

    x_i = jax.random.normal(k_xi, (B, L_I * TOKEN_ENCODER_DIM), jnp.float32)
    x_j = jax.random.normal(k_xj, (B, L_J * TOKEN_ENCODER_DIM), jnp.float32)

    out = cross_attention_encoder(x_i, x_j, params,
                                  token_encoder_dim=TOKEN_ENCODER_DIM, nhead=NHEAD)
    jax.block_until_ready(out)
    assert out.shape == (B, L_I * OUTPUT_DIM), out.shape
    assert jnp.all(jnp.isfinite(out))
    print("KERNEL_OK")
</pallas_src>

<mosaic_0001>
module attributes {stable_mosaic.version = 11 : i64} {
  func.func @encoder_kernel(%arg0: i32, %arg1: memref<1x16x16xf32, #tpu.memory_space<vmem>>, %arg2: memref<17x32xf32, #tpu.memory_space<vmem>>, %arg3: memref<2x7x32x32xbf16, #tpu.memory_space<vmem>>, %arg4: memref<2x10x1x32xf32, #tpu.memory_space<vmem>>, %arg5: memref<32x32xf32, #tpu.memory_space<vmem>>, %arg6: memref<33x16xf32, #tpu.memory_space<vmem>>, %arg7: memref<1x8x16xf32, #tpu.memory_space<vmem>>) attributes {dimension_semantics = [#tpu.dimension_semantics<parallel>], iteration_bounds = array<i64: 2>, scalar_prefetch = 0 : i64, scratch_operands = 0 : i64, tpu.core_type = #tpu.core_type<tc>, window_params = [{transform_indices = @transform_0, window_bounds = array<i64: 1, 16, 16>}, {pipeline_mode = #tpu.pipeline_mode<synchronous>, transform_indices = @transform_1, window_bounds = array<i64: 17, 32>}, {pipeline_mode = #tpu.pipeline_mode<synchronous>, transform_indices = @transform_2, window_bounds = array<i64: 2, 7, 32, 32>}, {pipeline_mode = #tpu.pipeline_mode<synchronous>, transform_indices = @transform_3, window_bounds = array<i64: 2, 10, 1, 32>}, {pipeline_mode = #tpu.pipeline_mode<synchronous>, transform_indices = @transform_4, window_bounds = array<i64: 32, 32>}, {pipeline_mode = #tpu.pipeline_mode<synchronous>, transform_indices = @transform_5, window_bounds = array<i64: 33, 16>}, {transform_indices = @transform_6, window_bounds = array<i64: 1, 8, 16>}]} {
    %c0 = arith.constant 0 : index
    %c0_0 = arith.constant 0 : index
    %c0_1 = arith.constant 0 : index
    %0 = vector.load %arg1[%c0, %c0_0, %c0_1] : memref<1x16x16xf32, #tpu.memory_space<vmem>>, vector<1x16x16xf32>
    %1 = vector.shape_cast %0 : vector<1x16x16xf32> to vector<16x16xf32>
    %c0_2 = arith.constant 0 : index
    %c0_3 = arith.constant 0 : index
    %2 = vector.load %arg2[%c0_2, %c0_3] : memref<17x32xf32, #tpu.memory_space<vmem>>, vector<17x32xf32>
    %c0_4 = arith.constant 0 : index
    %c0_5 = arith.constant 0 : index
    %3 = vector.load %arg5[%c0_4, %c0_5] : memref<32x32xf32, #tpu.memory_space<vmem>>, vector<32x32xf32>
    %4 = vector.extract_strided_slice %2 {offsets = [0, 0], sizes = [16, 32], strides = [1, 1]} : vector<17x32xf32> to vector<16x32xf32>
    %cst = arith.constant dense<0.000000e+00> : vector<16x32xf32>
    %5 = tpu.matmul %1, %4, %cst {dimension_numbers = #tpu.dot_dimension_numbers<[1], [0], [0], [1], [0, 0, 1, 1], [], []>} : vector<16x16xf32>, vector<16x32xf32>, vector<16x32xf32> -> vector<16x32xf32>
    %6 = vector.extract_strided_slice %2 {offsets = [16, 0], sizes = [1, 32], strides = [1, 1]} : vector<17x32xf32> to vector<1x32xf32>
    %7 = vector.broadcast %6 : vector<1x32xf32> to vector<16x32xf32>
    %8 = arith.addf %5, %7 : vector<16x32xf32>
    %9 = vector.extract_strided_slice %8 {offsets = [0, 0], sizes = [8, 32], strides = [1, 1]} : vector<16x32xf32> to vector<8x32xf32>
    %10 = vector.extract_strided_slice %8 {offsets = [8, 0], sizes = [8, 32], strides = [1, 1]} : vector<16x32xf32> to vector<8x32xf32>
    %11 = arith.truncf %10 : vector<8x32xf32> to vector<8x32xbf16>
    %12 = arith.truncf %9 : vector<8x32xf32> to vector<8x32xbf16>
    %c0_6 = arith.constant 0 : index
    %c0_7 = arith.constant 0 : index
    %c0_8 = arith.constant 0 : index
    %c0_9 = arith.constant 0 : index
    %13 = vector.load %arg3[%c0_6, %c0_7, %c0_8, %c0_9] : memref<2x7x32x32xbf16, #tpu.memory_space<vmem>>, vector<1x1x32x32xbf16>
    %14 = vector.shape_cast %13 : vector<1x1x32x32xbf16> to vector<32x32xbf16>
    %cst_10 = arith.constant dense<0.000000e+00> : vector<8x32xf32>
    %15 = tpu.matmul %12, %14, %cst_10 {dimension_numbers = #tpu.dot_dimension_numbers<[1], [0], [0], [1], [0, 0, 1, 1], [], []>} : vector<8x32xbf16>, vector<32x32xbf16>, vector<8x32xf32> -> vector<8x32xf32>
    %c0_11 = arith.constant 0 : index
    %c0_12 = arith.constant 0 : index
    %c0_13 = arith.constant 0 : index
    %c0_14 = arith.constant 0 : index
    %16 = vector.load %arg4[%c0_11, %c0_12, %c0_13, %c0_14] : memref<2x10x1x32xf32, #tpu.memory_space<vmem>>, vector<1x1x1x32xf32>
    %17 = vector.shape_cast %16 : vector<1x1x1x32xf32> to vector<1x32xf32>
    %18 = vector.broadcast %17 : vector<1x32xf32> to vector<8x32xf32>
    %19 = arith.addf %15, %18 : vector<8x32xf32>
    %c0_15 = arith.constant 0 : index
    %c1 = arith.constant 1 : index
    %c0_16 = arith.constant 0 : index
    %c0_17 = arith.constant 0 : index
    %20 = vector.load %arg3[%c0_15, %c1, %c0_16, %c0_17] : memref<2x7x32x32xbf16, #tpu.memory_space<vmem>>, vector<1x1x32x32xbf16>
    %21 = vector.shape_cast %20 : vector<1x1x32x32xbf16> to vector<32x32xbf16>
    %cst_18 = arith.constant dense<0.000000e+00> : vector<8x32xf32>
    %22 = tpu.matmul %11, %21, %cst_18 {dimension_numbers = #tpu.dot_dimension_numbers<[1], [0], [0], [1], [0, 0, 1, 1], [], []>} : vector<8x32xbf16>, vector<32x32xbf16>, vector<8x32xf32> -> vector<8x32xf32>
    %c0_19 = arith.constant 0 : index
    %c1_20 = arith.constant 1 : index
    %c0_21 = arith.constant 0 : index
    %c0_22 = arith.constant 0 : index
    %23 = vector.load %arg4[%c0_19, %c1_20, %c0_21, %c0_22] : memref<2x10x1x32xf32, #tpu.memory_space<vmem>>, vector<1x1x1x32xf32>
    %24 = vector.shape_cast %23 : vector<1x1x1x32xf32> to vector<1x32xf32>
    %25 = vector.broadcast %24 : vector<1x32xf32> to vector<8x32xf32>
    %26 = arith.addf %22, %25 : vector<8x32xf32>
    %c0_23 = arith.constant 0 : index
    %c2 = arith.constant 2 : index
    %c0_24 = arith.constant 0 : index
    %c0_25 = arith.constant 0 : index
    %27 = vector.load %arg3[%c0_23, %c2, %c0_24, %c0_25] : memref<2x7x32x32xbf16, #tpu.memory_space<vmem>>, vector<1x1x32x32xbf16>
    %28 = vector.shape_cast %27 : vector<1x1x32x32xbf16> to vector<32x32xbf16>
    %cst_26 = arith.constant dense<0.000000e+00> : vector<8x32xf32>
    %29 = tpu.matmul %11, %28, %cst_26 {dimension_numbers = #tpu.dot_dimension_numbers<[1], [0], [0], [1], [0, 0, 1, 1], [], []>} : vector<8x32xbf16>, vector<32x32xbf16>, vector<8x32xf32> -> vector<8x32xf32>
    %c0_27 = arith.constant 0 : index
    %c2_28 = arith.constant 2 : index
    %c0_29 = arith.constant 0 : index
    %c0_30 = arith.constant 0 : index
    %30 = vector.load %arg4[%c0_27, %c2_28, %c0_29, %c0_30] : memref<2x10x1x32xf32, #tpu.memory_space<vmem>>, vector<1x1x1x32xf32>
    %31 = vector.shape_cast %30 : vector<1x1x1x32xf32> to vector<1x32xf32>
    %32 = vector.broadcast %31 : vector<1x32xf32> to vector<8x32xf32>
    %33 = arith.addf %29, %32 : vector<8x32xf32>
    %cst_31 = arith.constant 0.353553385 : f32
    %34 = vector.broadcast %cst_31 : f32 to vector<8x32xf32>
    %35 = arith.mulf %19, %34 : vector<8x32xf32>
    %36 = arith.truncf %35 : vector<8x32xf32> to vector<8x32xbf16>
    %37 = tpu.concatenate %26, %26, %26, %26 in 0 : vector<8x32xf32>, vector<8x32xf32>, vector<8x32xf32>, vector<8x32xf32> -> vector<32x32xf32>
    %38 = arith.mulf %37, %3 : vector<32x32xf32>
    %39 = arith.truncf %38 : vector<32x32xf32> to vector<32x32xbf16>
    %40 = tpu.concatenate %33, %33, %33, %33 in 0 : vector<8x32xf32>, vector<8x32xf32>, vector<8x32xf32>, vector<8x32xf32> -> vector<32x32xf32>
    %41 = arith.mulf %40, %3 : vector<32x32xf32>
    %42 = arith.truncf %41 : vector<32x32xf32> to vector<32x32xbf16>
    %cst_32 = arith.constant dense<0.000000e+00> : vector<8x32xf32>
    %43 = tpu.matmul %36, %39, %cst_32 {dimension_numbers = #tpu.dot_dimension_numbers<[1], [1], [0], [0], [0, 0, 1, 0], [], []>} : vector<8x32xbf16>, vector<32x32xbf16>, vector<8x32xf32> -> vector<8x32xf32>
    %cst_33 = arith.constant dense<0xFF800000> : vector<8xf32>
    %44 = vector.multi_reduction <maximumf>, %43, %cst_33 [1] : vector<8x32xf32> to vector<8xf32>
    %45 = vector.shape_cast %44 : vector<8xf32> to vector<8x1xf32>
    %46 = vector.broadcast %45 : vector<8x1xf32> to vector<8x32xf32>
    %47 = arith.subf %43, %46 : vector<8x32xf32>
    %48 = math.exp %47 : vector<8x32xf32>
    %cst_34 = arith.constant dense<0.000000e+00> : vector<8x32xf32>
    %49 = tpu.matmul %48, %3, %cst_34 {dimension_numbers = #tpu.dot_dimension_numbers<[1], [0], [0], [1], [0, 0, 1, 1], [], []>} : vector<8x32xf32>, vector<32x32xf32>, vector<8x32xf32> -> vector<8x32xf32>
    %50 = arith.truncf %48 : vector<8x32xf32> to vector<8x32xbf16>
    %cst_35 = arith.constant dense<0.000000e+00> : vector<8x32xf32>
    %51 = tpu.matmul %50, %42, %cst_35 {dimension_numbers = #tpu.dot_dimension_numbers<[1], [0], [0], [1], [0, 0, 1, 1], [], []>} : vector<8x32xbf16>, vector<32x32xbf16>, vector<8x32xf32> -> vector<8x32xf32>
    %52 = arith.divf %51, %49 : vector<8x32xf32>
    %53 = arith.addf %9, %52 : vector<8x32xf32>
    %c0_36 = arith.constant 0 : index
    %c6 = arith.constant 6 : index
    %c0_37 = arith.constant 0 : index
    %c0_38 = arith.constant 0 : index
    %54 = vector.load %arg4[%c0_36, %c6, %c0_37, %c0_38] : memref<2x10x1x32xf32, #tpu.memory_space<vmem>>, vector<1x1x1x32xf32>
    %55 = vector.shape_cast %54 : vector<1x1x1x32xf32> to vector<1x32xf32>
    %c0_39 = arith.constant 0 : index
    %c7 = arith.constant 7 : index
    %c0_40 = arith.constant 0 : index
    %c0_41 = arith.constant 0 : index
    %56 = vector.load %arg4[%c0_39, %c7, %c0_40, %c0_41] : memref<2x10x1x32xf32, #tpu.memory_space<vmem>>, vector<1x1x1x32xf32>
    %57 = vector.shape_cast %56 : vector<1x1x1x32xf32> to vector<1x32xf32>
    %cst_42 = arith.constant dense<0.000000e+00> : vector<8xf32>
    %58 = vector.multi_reduction <add>, %53, %cst_42 [1] : vector<8x32xf32> to vector<8xf32>
    %59 = vector.shape_cast %58 : vector<8xf32> to vector<8x1xf32>
    %cst_43 = arith.constant 3.200000e+01 : f32
    %60 = vector.broadcast %cst_43 : f32 to vector<8x1xf32>
    %61 = arith.divf %59, %60 : vector<8x1xf32>
    %62 = arith.mulf %53, %53 : vector<8x32xf32>
    %cst_44 = arith.constant dense<0.000000e+00> : vector<8xf32>
    %63 = vector.multi_reduction <add>, %62, %cst_44 [1] : vector<8x32xf32> to vector<8xf32>
    %64 = vector.shape_cast %63 : vector<8xf32> to vector<8x1xf32>
    %cst_45 = arith.constant 3.200000e+01 : f32
    %65 = vector.broadcast %cst_45 : f32 to vector<8x1xf32>
    %66 = arith.divf %64, %65 : vector<8x1xf32>
    %67 = arith.mulf %61, %61 : vector<8x1xf32>
    %68 = arith.subf %66, %67 : vector<8x1xf32>
    %69 = vector.broadcast %61 : vector<8x1xf32> to vector<8x32xf32>
    %70 = arith.subf %53, %69 : vector<8x32xf32>
    %cst_46 = arith.constant 9.99999974E-6 : f32
    %71 = vector.broadcast %cst_46 : f32 to vector<8x1xf32>
    %72 = arith.addf %68, %71 : vector<8x1xf32>
    %73 = math.rsqrt %72 : vector<8x1xf32>
    %74 = vector.broadcast %73 : vector<8x1xf32> to vector<8x32xf32>
    %75 = arith.mulf %70, %74 : vector<8x32xf32>
    %76 = vector.broadcast %55 : vector<1x32xf32> to vector<8x32xf32>
    %77 = arith.mulf %75, %76 : vector<8x32xf32>
    %78 = vector.broadcast %57 : vector<1x32xf32> to vector<8x32xf32>
    %79 = arith.addf %77, %78 : vector<8x32xf32>
    %80 = arith.truncf %79 : vector<8x32xf32> to vector<8x32xbf16>
    %c0_47 = arith.constant 0 : index
    %c3 = arith.constant 3 : index
    %c0_48 = arith.constant 0 : index
    %c0_49 = arith.constant 0 : index
    %81 = vector.load %arg3[%c0_47, %c3, %c0_48, %c0_49] : memref<2x7x32x32xbf16, #tpu.memory_space<vmem>>, vector<1x1x32x32xbf16>
    %82 = vector.shape_cast %81 : vector<1x1x32x32xbf16> to vector<32x32xbf16>
    %cst_50 = arith.constant dense<0.000000e+00> : vector<8x32xf32>
    %83 = tpu.matmul %80, %82, %cst_50 {dimension_numbers = #tpu.dot_dimension_numbers<[1], [0], [0], [1], [0, 0, 1, 1], [], []>} : vector<8x32xbf16>, vector<32x32xbf16>, vector<8x32xf32> -> vector<8x32xf32>
    %c0_51 = arith.constant 0 : index
    %c3_52 = arith.constant 3 : index
    %c0_53 = arith.constant 0 : index
    %c0_54 = arith.constant 0 : index
    %84 = vector.load %arg4[%c0_51, %c3_52, %c0_53, %c0_54] : memref<2x10x1x32xf32, #tpu.memory_space<vmem>>, vector<1x1x1x32xf32>
    %85 = vector.shape_cast %84 : vector<1x1x1x32xf32> to vector<1x32xf32>
    %86 = vector.broadcast %85 : vector<1x32xf32> to vector<8x32xf32>
    %87 = arith.addf %83, %86 : vector<8x32xf32>
    %cst_55 = arith.constant 0.000000e+00 : f32
    %88 = vector.broadcast %cst_55 : f32 to vector<8x32xf32>
    %89 = arith.maximumf %87, %88 : vector<8x32xf32>
    %c0_56 = arith.constant 0 : index
    %c4 = arith.constant 4 : index
    %c0_57 = arith.constant 0 : index
    %c0_58 = arith.constant 0 : index
    %90 = vector.load %arg3[%c0_56, %c4, %c0_57, %c0_58] : memref<2x7x32x32xbf16, #tpu.memory_space<vmem>>, vector<1x1x32x32xbf16>
    %91 = vector.shape_cast %90 : vector<1x1x32x32xbf16> to vector<32x32xbf16>
    %cst_59 = arith.constant dense<0.000000e+00> : vector<8x32xf32>
    %92 = tpu.matmul %80, %91, %cst_59 {dimension_numbers = #tpu.dot_dimension_numbers<[1], [0], [0], [1], [0, 0, 1, 1], [], []>} : vector<8x32xbf16>, vector<32x32xbf16>, vector<8x32xf32> -> vector<8x32xf32>
    %c0_60 = arith.constant 0 : index
    %c4_61 = arith.constant 4 : index
    %c0_62 = arith.constant 0 : index
    %c0_63 = arith.constant 0 : index
    %93 = vector.load %arg4[%c0_60, %c4_61, %c0_62, %c0_63] : memref<2x10x1x32xf32, #tpu.memory_space<vmem>>, vector<1x1x1x32xf32>
    %94 = vector.shape_cast %93 : vector<1x1x1x32xf32> to vector<1x32xf32>
    %95 = vector.broadcast %94 : vector<1x32xf32> to vector<8x32xf32>
    %96 = arith.addf %92, %95 : vector<8x32xf32>
    %cst_64 = arith.constant 0.000000e+00 : f32
    %97 = vector.broadcast %cst_64 : f32 to vector<8x32xf32>
    %98 = arith.maximumf %96, %97 : vector<8x32xf32>
    %99 = arith.truncf %89 : vector<8x32xf32> to vector<8x32xbf16>
    %c0_65 = arith.constant 0 : index
    %c5 = arith.constant 5 : index
    %c0_66 = arith.constant 0 : index
    %c0_67 = arith.constant 0 : index
    %100 = vector.load %arg3[%c0_65, %c5, %c0_66, %c0_67] : memref<2x7x32x32xbf16, #tpu.memory_space<vmem>>, vector<1x1x32x32xbf16>
    %101 = vector.shape_cast %100 : vector<1x1x32x32xbf16> to vector<32x32xbf16>
    %cst_68 = arith.constant dense<0.000000e+00> : vector<8x32xf32>
    %102 = tpu.matmul %99, %101, %cst_68 {dimension_numbers = #tpu.dot_dimension_numbers<[1], [0], [0], [1], [0, 0, 1, 1], [], []>} : vector<8x32xbf16>, vector<32x32xbf16>, vector<8x32xf32> -> vector<8x32xf32>
    %103 = arith.truncf %98 : vector<8x32xf32> to vector<8x32xbf16>
    %c0_69 = arith.constant 0 : index
    %c6_70 = arith.constant 6 : index
    %c0_71 = arith.constant 0 : index
    %c0_72 = arith.constant 0 : index
    %104 = vector.load %arg3[%c0_69, %c6_70, %c0_71, %c0_72] : memref<2x7x32x32xbf16, #tpu.memory_space<vmem>>, vector<1x1x32x32xbf16>
    %105 = vector.shape_cast %104 : vector<1x1x32x32xbf16> to vector<32x32xbf16>
    %cst_73 = arith.constant dense<0.000000e+00> : vector<8x32xf32>
    %106 = tpu.matmul %103, %105, %cst_73 {dimension_numbers = #tpu.dot_dimension_numbers<[1], [0], [0], [1], [0, 0, 1, 1], [], []>} : vector<8x32xbf16>, vector<32x32xbf16>, vector<8x32xf32> -> vector<8x32xf32>
    %107 = arith.addf %102, %106 : vector<8x32xf32>
    %c0_74 = arith.constant 0 : index
    %c5_75 = arith.constant 5 : index
    %c0_76 = arith.constant 0 : index
    %c0_77 = arith.constant 0 : index
    %108 = vector.load %arg4[%c0_74, %c5_75, %c0_76, %c0_77] : memref<2x10x1x32xf32, #tpu.memory_space<vmem>>, vector<1x1x1x32xf32>
    %109 = vector.shape_cast %108 : vector<1x1x1x32xf32> to vector<1x32xf32>
    %110 = vector.broadcast %109 : vector<1x32xf32> to vector<8x32xf32>
    %111 = arith.addf %107, %110 : vector<8x32xf32>
    %112 = arith.addf %79, %111 : vector<8x32xf32>
    %c0_78 = arith.constant 0 : index
    %c8 = arith.constant 8 : index
    %c0_79 = arith.constant 0 : index
    %c0_80 = arith.constant 0 : index
    %113 = vector.load %arg4[%c0_78, %c8, %c0_79, %c0_80] : memref<2x10x1x32xf32, #tpu.memory_space<vmem>>, vector<1x1x1x32xf32>
    %114 = vector.shape_cast %113 : vector<1x1x1x32xf32> to vector<1x32xf32>
    %c0_81 = arith.constant 0 : index
    %c9 = arith.constant 9 : index
    %c0_82 = arith.constant 0 : index
    %c0_83 = arith.constant 0 : index
    %115 = vector.load %arg4[%c0_81, %c9, %c0_82, %c0_83] : memref<2x10x1x32xf32, #tpu.memory_space<vmem>>, vector<1x1x1x32xf32>
    %116 = vector.shape_cast %115 : vector<1x1x1x32xf32> to vector<1x32xf32>
    %cst_84 = arith.constant dense<0.000000e+00> : vector<8xf32>
    %117 = vector.multi_reduction <add>, %112, %cst_84 [1] : vector<8x32xf32> to vector<8xf32>
    %118 = vector.shape_cast %117 : vector<8xf32> to vector<8x1xf32>
    %cst_85 = arith.constant 3.200000e+01 : f32
    %119 = vector.broadcast %cst_85 : f32 to vector<8x1xf32>
    %120 = arith.divf %118, %119 : vector<8x1xf32>
    %121 = arith.mulf %112, %112 : vector<8x32xf32>
    %cst_86 = arith.constant dense<0.000000e+00> : vector<8xf32>
    %122 = vector.multi_reduction <add>, %121, %cst_86 [1] : vector<8x32xf32> to vector<8xf32>
    %123 = vector.shape_cast %122 : vector<8xf32> to vector<8x1xf32>
    %cst_87 = arith.constant 3.200000e+01 : f32
    %124 = vector.broadcast %cst_87 : f32 to vector<8x1xf32>
    %125 = arith.divf %123, %124 : vector<8x1xf32>
    %126 = arith.mulf %120, %120 : vector<8x1xf32>
    %127 = arith.subf %125, %126 : vector<8x1xf32>
    %128 = vector.broadcast %120 : vector<8x1xf32> to vector<8x32xf32>
    %129 = arith.subf %112, %128 : vector<8x32xf32>
    %cst_88 = arith.constant 9.99999974E-6 : f32
    %130 = vector.broadcast %cst_88 : f32 to vector<8x1xf32>
    %131 = arith.addf %127, %130 : vector<8x1xf32>
    %132 = math.rsqrt %131 : vector<8x1xf32>
    %133 = vector.broadcast %132 : vector<8x1xf32> to vector<8x32xf32>
    %134 = arith.mulf %129, %133 : vector<8x32xf32>
    %135 = vector.broadcast %114 : vector<1x32xf32> to vector<8x32xf32>
    %136 = arith.mulf %134, %135 : vector<8x32xf32>
    %137 = vector.broadcast %116 : vector<1x32xf32> to vector<8x32xf32>
    %138 = arith.addf %136, %137 : vector<8x32xf32>
    %139 = arith.truncf %138 : vector<8x32xf32> to vector<8x32xbf16>
    %c1_89 = arith.constant 1 : index
    %c0_90 = arith.constant 0 : index
    %c0_91 = arith.constant 0 : index
    %c0_92 = arith.constant 0 : index
    %140 = vector.load %arg3[%c1_89, %c0_90, %c0_91, %c0_92] : memref<2x7x32x32xbf16, #tpu.memory_space<vmem>>, vector<1x1x32x32xbf16>
    %141 = vector.shape_cast %140 : vector<1x1x32x32xbf16> to vector<32x32xbf16>
    %cst_93 = arith.constant dense<0.000000e+00> : vector<8x32xf32>
    %142 = tpu.matmul %139, %141, %cst_93 {dimension_numbers = #tpu.dot_dimension_numbers<[1], [0], [0], [1], [0, 0, 1, 1], [], []>} : vector<8x32xbf16>, vector<32x32xbf16>, vector<8x32xf32> -> vector<8x32xf32>
    %c1_94 = arith.constant 1 : index
    %c0_95 = arith.constant 0 : index
    %c0_96 = arith.constant 0 : index
    %c0_97 = arith.constant 0 : index
    %143 = vector.load %arg4[%c1_94, %c0_95, %c0_96, %c0_97] : memref<2x10x1x32xf32, #tpu.memory_space<vmem>>, vector<1x1x1x32xf32>
    %144 = vector.shape_cast %143 : vector<1x1x1x32xf32> to vector<1x32xf32>
    %145 = vector.broadcast %144 : vector<1x32xf32> to vector<8x32xf32>
    %146 = arith.addf %142, %145 : vector<8x32xf32>
    %c1_98 = arith.constant 1 : index
    %c1_99 = arith.constant 1 : index
    %c0_100 = arith.constant 0 : index
    %c0_101 = arith.constant 0 : index
    %147 = vector.load %arg3[%c1_98, %c1_99, %c0_100, %c0_101] : memref<2x7x32x32xbf16, #tpu.memory_space<vmem>>, vector<1x1x32x32xbf16>
    %148 = vector.shape_cast %147 : vector<1x1x32x32xbf16> to vector<32x32xbf16>
    %cst_102 = arith.constant dense<0.000000e+00> : vector<8x32xf32>
    %149 = tpu.matmul %11, %148, %cst_102 {dimension_numbers = #tpu.dot_dimension_numbers<[1], [0], [0], [1], [0, 0, 1, 1], [], []>} : vector<8x32xbf16>, vector<32x32xbf16>, vector<8x32xf32> -> vector<8x32xf32>
    %c1_103 = arith.constant 1 : index
    %c1_104 = arith.constant 1 : index
    %c0_105 = arith.constant 0 : index
    %c0_106 = arith.constant 0 : index
    %150 = vector.load %arg4[%c1_103, %c1_104, %c0_105, %c0_106] : memref<2x10x1x32xf32, #tpu.memory_space<vmem>>, vector<1x1x1x32xf32>
    %151 = vector.shape_cast %150 : vector<1x1x1x32xf32> to vector<1x32xf32>
    %152 = vector.broadcast %151 : vector<1x32xf32> to vector<8x32xf32>
    %153 = arith.addf %149, %152 : vector<8x32xf32>
    %c1_107 = arith.constant 1 : index
    %c2_108 = arith.constant 2 : index
    %c0_109 = arith.constant 0 : index
    %c0_110 = arith.constant 0 : index
    %154 = vector.load %arg3[%c1_107, %c2_108, %c0_109, %c0_110] : memref<2x7x32x32xbf16, #tpu.memory_space<vmem>>, vector<1x1x32x32xbf16>
    %155 = vector.shape_cast %154 : vector<1x1x32x32xbf16> to vector<32x32xbf16>
    %cst_111 = arith.constant dense<0.000000e+00> : vector<8x32xf32>
    %156 = tpu.matmul %11, %155, %cst_111 {dimension_numbers = #tpu.dot_dimension_numbers<[1], [0], [0], [1], [0, 0, 1, 1], [], []>} : vector<8x32xbf16>, vector<32x32xbf16>, vector<8x32xf32> -> vector<8x32xf32>
    %c1_112 = arith.constant 1 : index
    %c2_113 = arith.constant 2 : index
    %c0_114 = arith.constant 0 : index
    %c0_115 = arith.constant 0 : index
    %157 = vector.load %arg4[%c1_112, %c2_113, %c0_114, %c0_115] : memref<2x10x1x32xf32, #tpu.memory_space<vmem>>, vector<1x1x1x32xf32>
    %158 = vector.shape_cast %157 : vector<1x1x1x32xf32> to vector<1x32xf32>
    %159 = vector.broadcast %158 : vector<1x32xf32> to vector<8x32xf32>
    %160 = arith.addf %156, %159 : vector<8x32xf32>
    %cst_116 = arith.constant 0.353553385 : f32
    %161 = vector.broadcast %cst_116 : f32 to vector<8x32xf32>
    %162 = arith.mulf %146, %161 : vector<8x32xf32>
    %163 = arith.truncf %162 : vector<8x32xf32> to vector<8x32xbf16>
    %164 = tpu.concatenate %153, %153, %153, %153 in 0 : vector<8x32xf32>, vector<8x32xf32>, vector<8x32xf32>, vector<8x32xf32> -> vector<32x32xf32>
    %165 = arith.mulf %164, %3 : vector<32x32xf32>
    %166 = arith.truncf %165 : vector<32x32xf32> to vector<32x32xbf16>
    %167 = tpu.concatenate %160, %160, %160, %160 in 0 : vector<8x32xf32>, vector<8x32xf32>, vector<8x32xf32>, vector<8x32xf32> -> vector<32x32xf32>
    %168 = arith.mulf %167, %3 : vector<32x32xf32>
    %169 = arith.truncf %168 : vector<32x32xf32> to vector<32x32xbf16>
    %cst_117 = arith.constant dense<0.000000e+00> : vector<8x32xf32>
    %170 = tpu.matmul %163, %166, %cst_117 {dimension_numbers = #tpu.dot_dimension_numbers<[1], [1], [0], [0], [0, 0, 1, 0], [], []>} : vector<8x32xbf16>, vector<32x32xbf16>, vector<8x32xf32> -> vector<8x32xf32>
    %cst_118 = arith.constant dense<0xFF800000> : vector<8xf32>
    %171 = vector.multi_reduction <maximumf>, %170, %cst_118 [1] : vector<8x32xf32> to vector<8xf32>
    %172 = vector.shape_cast %171 : vector<8xf32> to vector<8x1xf32>
    %173 = vector.broadcast %172 : vector<8x1xf32> to vector<8x32xf32>
    %174 = arith.subf %170, %173 : vector<8x32xf32>
    %175 = math.exp %174 : vector<8x32xf32>
    %cst_119 = arith.constant dense<0.000000e+00> : vector<8x32xf32>
    %176 = tpu.matmul %175, %3, %cst_119 {dimension_numbers = #tpu.dot_dimension_numbers<[1], [0], [0], [1], [0, 0, 1, 1], [], []>} : vector<8x32xf32>, vector<32x32xf32>, vector<8x32xf32> -> vector<8x32xf32>
    %177 = arith.truncf %175 : vector<8x32xf32> to vector<8x32xbf16>
    %cst_120 = arith.constant dense<0.000000e+00> : vector<8x32xf32>
    %178 = tpu.matmul %177, %169, %cst_120 {dimension_numbers = #tpu.dot_dimension_numbers<[1], [0], [0], [1], [0, 0, 1, 1], [], []>} : vector<8x32xbf16>, vector<32x32xbf16>, vector<8x32xf32> -> vector<8x32xf32>
    %179 = arith.divf %178, %176 : vector<8x32xf32>
    %180 = arith.addf %138, %179 : vector<8x32xf32>
    %c1_121 = arith.constant 1 : index
    %c6_122 = arith.constant 6 : index
    %c0_123 = arith.constant 0 : index
    %c0_124 = arith.constant 0 : index
    %181 = vector.load %arg4[%c1_121, %c6_122, %c0_123, %c0_124] : memref<2x10x1x32xf32, #tpu.memory_space<vmem>>, vector<1x1x1x32xf32>
    %182 = vector.shape_cast %181 : vector<1x1x1x32xf32> to vector<1x32xf32>
    %c1_125 = arith.constant 1 : index
    %c7_126 = arith.constant 7 : index
    %c0_127 = arith.constant 0 : index
    %c0_128 = arith.constant 0 : index
    %183 = vector.load %arg4[%c1_125, %c7_126, %c0_127, %c0_128] : memref<2x10x1x32xf32, #tpu.memory_space<vmem>>, vector<1x1x1x32xf32>
    %184 = vector.shape_cast %183 : vector<1x1x1x32xf32> to vector<1x32xf32>
    %cst_129 = arith.constant dense<0.000000e+00> : vector<8xf32>
    %185 = vector.multi_reduction <add>, %180, %cst_129 [1] : vector<8x32xf32> to vector<8xf32>
    %186 = vector.shape_cast %185 : vector<8xf32> to vector<8x1xf32>
    %cst_130 = arith.constant 3.200000e+01 : f32
    %187 = vector.broadcast %cst_130 : f32 to vector<8x1xf32>
    %188 = arith.divf %186, %187 : vector<8x1xf32>
    %189 = arith.mulf %180, %180 : vector<8x32xf32>
    %cst_131 = arith.constant dense<0.000000e+00> : vector<8xf32>
    %190 = vector.multi_reduction <add>, %189, %cst_131 [1] : vector<8x32xf32> to vector<8xf32>
    %191 = vector.shape_cast %190 : vector<8xf32> to vector<8x1xf32>
    %cst_132 = arith.constant 3.200000e+01 : f32
    %192 = vector.broadcast %cst_132 : f32 to vector<8x1xf32>
    %193 = arith.divf %191, %192 : vector<8x1xf32>
    %194 = arith.mulf %188, %188 : vector<8x1xf32>
    %195 = arith.subf %193, %194 : vector<8x1xf32>
    %196 = vector.broadcast %188 : vector<8x1xf32> to vector<8x32xf32>
    %197 = arith.subf %180, %196 : vector<8x32xf32>
    %cst_133 = arith.constant 9.99999974E-6 : f32
    %198 = vector.broadcast %cst_133 : f32 to vector<8x1xf32>
    %199 = arith.addf %195, %198 : vector<8x1xf32>
    %200 = math.rsqrt %199 : vector<8x1xf32>
    %201 = vector.broadcast %200 : vector<8x1xf32> to vector<8x32xf32>
    %202 = arith.mulf %197, %201 : vector<8x32xf32>
    %203 = vector.broadcast %182 : vector<1x32xf32> to vector<8x32xf32>
    %204 = arith.mulf %202, %203 : vector<8x32xf32>
    %205 = vector.broadcast %184 : vector<1x32xf32> to vector<8x32xf32>
    %206 = arith.addf %204, %205 : vector<8x32xf32>
    %207 = arith.truncf %206 : vector<8x32xf32> to vector<8x32xbf16>
    %c1_134 = arith.constant 1 : index
    %c3_135 = arith.constant 3 : index
    %c0_136 = arith.constant 0 : index
    %c0_137 = arith.constant 0 : index
    %208 = vector.load %arg3[%c1_134, %c3_135, %c0_136, %c0_137] : memref<2x7x32x32xbf16, #tpu.memory_space<vmem>>, vector<1x1x32x32xbf16>
    %209 = vector.shape_cast %208 : vector<1x1x32x32xbf16> to vector<32x32xbf16>
    %cst_138 = arith.constant dense<0.000000e+00> : vector<8x32xf32>
    %210 = tpu.matmul %207, %209, %cst_138 {dimension_numbers = #tpu.dot_dimension_numbers<[1], [0], [0], [1], [0, 0, 1, 1], [], []>} : vector<8x32xbf16>, vector<32x32xbf16>, vector<8x32xf32> -> vector<8x32xf32>
    %c1_139 = arith.constant 1 : index
    %c3_140 = arith.constant 3 : index
    %c0_141 = arith.constant 0 : index
    %c0_142 = arith.constant 0 : index
    %211 = vector.load %arg4[%c1_139, %c3_140, %c0_141, %c0_142] : memref<2x10x1x32xf32, #tpu.memory_space<vmem>>, vector<1x1x1x32xf32>
    %212 = vector.shape_cast %211 : vector<1x1x1x32xf32> to vector<1x32xf32>
    %213 = vector.broadcast %212 : vector<1x32xf32> to vector<8x32xf32>
    %214 = arith.addf %210, %213 : vector<8x32xf32>
    %cst_143 = arith.constant 0.000000e+00 : f32
    %215 = vector.broadcast %cst_143 : f32 to vector<8x32xf32>
    %216 = arith.maximumf %214, %215 : vector<8x32xf32>
    %c1_144 = arith.constant 1 : index
    %c4_145 = arith.constant 4 : index
    %c0_146 = arith.constant 0 : index
    %c0_147 = arith.constant 0 : index
    %217 = vector.load %arg3[%c1_144, %c4_145, %c0_146, %c0_147] : memref<2x7x32x32xbf16, #tpu.memory_space<vmem>>, vector<1x1x32x32xbf16>
    %218 = vector.shape_cast %217 : vector<1x1x32x32xbf16> to vector<32x32xbf16>
    %cst_148 = arith.constant dense<0.000000e+00> : vector<8x32xf32>
    %219 = tpu.matmul %207, %218, %cst_148 {dimension_numbers = #tpu.dot_dimension_numbers<[1], [0], [0], [1], [0, 0, 1, 1], [], []>} : vector<8x32xbf16>, vector<32x32xbf16>, vector<8x32xf32> -> vector<8x32xf32>
    %c1_149 = arith.constant 1 : index
    %c4_150 = arith.constant 4 : index
    %c0_151 = arith.constant 0 : index
    %c0_152 = arith.constant 0 : index
    %220 = vector.load %arg4[%c1_149, %c4_150, %c0_151, %c0_152] : memref<2x10x1x32xf32, #tpu.memory_space<vmem>>, vector<1x1x1x32xf32>
    %221 = vector.shape_cast %220 : vector<1x1x1x32xf32> to vector<1x32xf32>
    %222 = vector.broadcast %221 : vector<1x32xf32> to vector<8x32xf32>
    %223 = arith.addf %219, %222 : vector<8x32xf32>
    %cst_153 = arith.constant 0.000000e+00 : f32
    %224 = vector.broadcast %cst_153 : f32 to vector<8x32xf32>
    %225 = arith.maximumf %223, %224 : vector<8x32xf32>
    %226 = arith.truncf %216 : vector<8x32xf32> to vector<8x32xbf16>
    %c1_154 = arith.constant 1 : index
    %c5_155 = arith.constant 5 : index
    %c0_156 = arith.constant 0 : index
    %c0_157 = arith.constant 0 : index
    %227 = vector.load %arg3[%c1_154, %c5_155, %c0_156, %c0_157] : memref<2x7x32x32xbf16, #tpu.memory_space<vmem>>, vector<1x1x32x32xbf16>
    %228 = vector.shape_cast %227 : vector<1x1x32x32xbf16> to vector<32x32xbf16>
    %cst_158 = arith.constant dense<0.000000e+00> : vector<8x32xf32>
    %229 = tpu.matmul %226, %228, %cst_158 {dimension_numbers = #tpu.dot_dimension_numbers<[1], [0], [0], [1], [0, 0, 1, 1], [], []>} : vector<8x32xbf16>, vector<32x32xbf16>, vector<8x32xf32> -> vector<8x32xf32>
    %230 = arith.truncf %225 : vector<8x32xf32> to vector<8x32xbf16>
    %c1_159 = arith.constant 1 : index
    %c6_160 = arith.constant 6 : index
    %c0_161 = arith.constant 0 : index
    %c0_162 = arith.constant 0 : index
    %231 = vector.load %arg3[%c1_159, %c6_160, %c0_161, %c0_162] : memref<2x7x32x32xbf16, #tpu.memory_space<vmem>>, vector<1x1x32x32xbf16>
    %232 = vector.shape_cast %231 : vector<1x1x32x32xbf16> to vector<32x32xbf16>
    %cst_163 = arith.constant dense<0.000000e+00> : vector<8x32xf32>
    %233 = tpu.matmul %230, %232, %cst_163 {dimension_numbers = #tpu.dot_dimension_numbers<[1], [0], [0], [1], [0, 0, 1, 1], [], []>} : vector<8x32xbf16>, vector<32x32xbf16>, vector<8x32xf32> -> vector<8x32xf32>
    %234 = arith.addf %229, %233 : vector<8x32xf32>
    %c1_164 = arith.constant 1 : index
    %c5_165 = arith.constant 5 : index
    %c0_166 = arith.constant 0 : index
    %c0_167 = arith.constant 0 : index
    %235 = vector.load %arg4[%c1_164, %c5_165, %c0_166, %c0_167] : memref<2x10x1x32xf32, #tpu.memory_space<vmem>>, vector<1x1x1x32xf32>
    %236 = vector.shape_cast %235 : vector<1x1x1x32xf32> to vector<1x32xf32>
    %237 = vector.broadcast %236 : vector<1x32xf32> to vector<8x32xf32>
    %238 = arith.addf %234, %237 : vector<8x32xf32>
    %239 = arith.addf %206, %238 : vector<8x32xf32>
    %c1_168 = arith.constant 1 : index
    %c8_169 = arith.constant 8 : index
    %c0_170 = arith.constant 0 : index
    %c0_171 = arith.constant 0 : index
    %240 = vector.load %arg4[%c1_168, %c8_169, %c0_170, %c0_171] : memref<2x10x1x32xf32, #tpu.memory_space<vmem>>, vector<1x1x1x32xf32>
    %241 = vector.shape_cast %240 : vector<1x1x1x32xf32> to vector<1x32xf32>
    %c1_172 = arith.constant 1 : index
    %c9_173 = arith.constant 9 : index
    %c0_174 = arith.constant 0 : index
    %c0_175 = arith.constant 0 : index
    %242 = vector.load %arg4[%c1_172, %c9_173, %c0_174, %c0_175] : memref<2x10x1x32xf32, #tpu.memory_space<vmem>>, vector<1x1x1x32xf32>
    %243 = vector.shape_cast %242 : vector<1x1x1x32xf32> to vector<1x32xf32>
    %cst_176 = arith.constant dense<0.000000e+00> : vector<8xf32>
    %244 = vector.multi_reduction <add>, %239, %cst_176 [1] : vector<8x32xf32> to vector<8xf32>
    %245 = vector.shape_cast %244 : vector<8xf32> to vector<8x1xf32>
    %cst_177 = arith.constant 3.200000e+01 : f32
    %246 = vector.broadcast %cst_177 : f32 to vector<8x1xf32>
    %247 = arith.divf %245, %246 : vector<8x1xf32>
    %248 = arith.mulf %239, %239 : vector<8x32xf32>
    %cst_178 = arith.constant dense<0.000000e+00> : vector<8xf32>
    %249 = vector.multi_reduction <add>, %248, %cst_178 [1] : vector<8x32xf32> to vector<8xf32>
    %250 = vector.shape_cast %249 : vector<8xf32> to vector<8x1xf32>
    %cst_179 = arith.constant 3.200000e+01 : f32
    %251 = vector.broadcast %cst_179 : f32 to vector<8x1xf32>
    %252 = arith.divf %250, %251 : vector<8x1xf32>
    %253 = arith.mulf %247, %247 : vector<8x1xf32>
    %254 = arith.subf %252, %253 : vector<8x1xf32>
    %255 = vector.broadcast %247 : vector<8x1xf32> to vector<8x32xf32>
    %256 = arith.subf %239, %255 : vector<8x32xf32>
    %cst_180 = arith.constant 9.99999974E-6 : f32
    %257 = vector.broadcast %cst_180 : f32 to vector<8x1xf32>
    %258 = arith.addf %254, %257 : vector<8x1xf32>
    %259 = math.rsqrt %258 : vector<8x1xf32>
    %260 = vector.broadcast %259 : vector<8x1xf32> to vector<8x32xf32>
    %261 = arith.mulf %256, %260 : vector<8x32xf32>
    %262 = vector.broadcast %241 : vector<1x32xf32> to vector<8x32xf32>
    %263 = arith.mulf %261, %262 : vector<8x32xf32>
    %264 = vector.broadcast %243 : vector<1x32xf32> to vector<8x32xf32>
    %265 = arith.addf %263, %264 : vector<8x32xf32>
    %c0_181 = arith.constant 0 : index
    %c0_182 = arith.constant 0 : index
    %266 = vector.load %arg6[%c0_181, %c0_182] : memref<33x16xf32, #tpu.memory_space<vmem>>, vector<33x16xf32>
    %267 = vector.extract_strided_slice %266 {offsets = [0, 0], sizes = [32, 16], strides = [1, 1]} : vector<33x16xf32> to vector<32x16xf32>
    %cst_183 = arith.constant dense<0.000000e+00> : vector<8x16xf32>
    %268 = tpu.matmul %265, %267, %cst_183 {dimension_numbers = #tpu.dot_dimension_numbers<[1], [0], [0], [1], [0, 0, 1, 1], [], []>} : vector<8x32xf32>, vector<32x16xf32>, vector<8x16xf32> -> vector<8x16xf32>
    %269 = vector.extract_strided_slice %266 {offsets = [32, 0], sizes = [1, 16], strides = [1, 1]} : vector<33x16xf32> to vector<1x16xf32>
    %270 = vector.broadcast %269 : vector<1x16xf32> to vector<8x16xf32>
    %271 = arith.addf %268, %270 : vector<8x16xf32>
    %c0_184 = arith.constant 0 : index
    %c0_185 = arith.constant 0 : index
    %c0_186 = arith.constant 0 : index
    %272 = vector.load %arg7[%c0_184, %c0_185, %c0_186] : memref<1x8x16xf32, #tpu.memory_space<vmem>>, vector<1x8x16xf32>
    %273 = vector.shape_cast %272 : vector<1x8x16xf32> to vector<8x16xf32>
    %274 = vector.shape_cast %271 : vector<8x16xf32> to vector<1x8x16xf32>
    tpu.vector_store %arg7[%c0_184, %c0_185, %c0_186], %274 {strides = array<i32>} : memref<1x8x16xf32, #tpu.memory_space<vmem>>, vector<1x8x16xf32>,
    return
  }
  func.func @transform_0(%arg0: i32) -> (i32, i32, i32) {
    %c0_i32 = arith.constant 0 : i32
    %c0_i32_0 = arith.constant 0 : i32
    %c0_i32_1 = arith.constant 0 : i32
    return %arg0, %c0_i32, %c0_i32_0 : i32, i32, i32
  }
  func.func @transform_1(%arg0: i32) -> (i32, i32) {
    %c0_i32 = arith.constant 0 : i32
    %c0_i32_0 = arith.constant 0 : i32
    %c0_i32_1 = arith.constant 0 : i32
    return %c0_i32, %c0_i32_0 : i32, i32
  }
  func.func @transform_2(%arg0: i32) -> (i32, i32, i32, i32) {
    %c0_i32 = arith.constant 0 : i32
    %c0_i32_0 = arith.constant 0 : i32
    %c0_i32_1 = arith.constant 0 : i32
    %c0_i32_2 = arith.constant 0 : i32
    %c0_i32_3 = arith.constant 0 : i32
    return %c0_i32, %c0_i32_0, %c0_i32_1, %c0_i32_2 : i32, i32, i32, i32
  }
  func.func @transform_3(%arg0: i32) -> (i32, i32, i32, i32) {
    %c0_i32 = arith.constant 0 : i32
    %c0_i32_0 = arith.constant 0 : i32
    %c0_i32_1 = arith.constant 0 : i32
    %c0_i32_2 = arith.constant 0 : i32
    %c0_i32_3 = arith.constant 0 : i32
    return %c0_i32, %c0_i32_0, %c0_i32_1, %c0_i32_2 : i32, i32, i32, i32
  }
  func.func @transform_4(%arg0: i32) -> (i32, i32) {
    %c0_i32 = arith.constant 0 : i32
    %c0_i32_0 = arith.constant 0 : i32
    %c0_i32_1 = arith.constant 0 : i32
    return %c0_i32, %c0_i32_0 : i32, i32
  }
  func.func @transform_5(%arg0: i32) -> (i32, i32) {
    %c0_i32 = arith.constant 0 : i32
    %c0_i32_0 = arith.constant 0 : i32
    %c0_i32_1 = arith.constant 0 : i32
    return %c0_i32, %c0_i32_0 : i32, i32
  }
  func.func @transform_6(%arg0: i32) -> (i32, i32, i32) {
    %c0_i32 = arith.constant 0 : i32
    %c0_i32_0 = arith.constant 0 : i32
    %c0_i32_1 = arith.constant 0 : i32
    return %arg0, %c0_i32, %c0_i32_0 : i32, i32, i32
  }
}

</mosaic_0001>

<bundles_post_ra>
// kernel: tpu_custom_call.1
= control target key start
LH: loop header
LB: loop body
LE: loop exit
PB: predicated region body
PF: predicated region fallthrough
CT: control target
= control target key end

     0   :  { %s2090_s0 = inlined_call_operand.vmem [shape: f32[2,16,16], index: 0, kind: input, shape index: {}]   ;;  %s2091_s1 = inlined_call_operand.vmem [shape: f32[17,32], index: 1, kind: input, shape index: {}]   ;;  %s2092_s2 = inlined_call_operand.hbm [shape: bf16[2,7,32,32], index: 2, kind: input, shape index: {}]   ;;  %s2093_s3 = inlined_call_operand.hbm [shape: f32[2,10,1,32], index: 3, kind: input, shape index: {}]   ;;  %s2094_s4 = inlined_call_operand.hbm [shape: f32[32,32], index: 4, kind: input, shape index: {}]   ;;  %s2095_s5 = inlined_call_operand.vmem [shape: f32[33,16], index: 5, kind: input, shape index: {}]   ;;  %s2096_s6 = inlined_call_operand.hbm [shape: f32[2,8,16], index: 6, kind: output, shape index: {}]  }
   0x1   :  { %2097 = sst [smem:[#allocation13_spill]] %s2092_s2 }
   0x2   :  { %2098 = sst [smem:[#allocation14_spill]] %s2093_s3 }
   0x3   :  { %11 = vsyncpa [#allocation3], 0 }
   0x4   :  { %12 = vsyncpa [#allocation6], 0 }
   0x5   :  { %13 = vsyncpa [#allocation4], 0 }
   0x6   :  { %15 = vsyncpa [#allocation4 + $0x1], 0  ;;  %s1852_s21 = smov 0   ;;  %s1854_s22 = smov 0  }
   0x7   :  { %s1856_s23 = smov 0   ;;  %s1858_s24 = smov 0  }
   0x8 LB: > { %s1873_s25 = sadd.s32 4294967295, %s1805_s24   ;;  %s1347_s26 = sadd.s32 4294967294, %s1805_s24   ;;  %s1805_s24 = sphi %s1858_s24, %s2110_s24   ;;  %s1801_s23 = sphi %s1856_s23, %s2109_s23   ;;  %s1797_s22 = sphi %s1854_s22, %s2108_s22   ;;  %s1793_s21 = sphi %s1852_s21, %s2107_s21  }
   0x9   : > { %s1877_s27 = sadd.s32 1, %s1805_s24   ;;  %s159_s28 = sadd.s32 1, %s1801_s23 }
   0xa   : > { %s156_s29 = ssub.s32 %s1805_s24, %s1877_s27  ;;  %p169_p0 = scmp.ne.s32.totalorder %s1801_s23, %s1797_s22 }
   0xb   : > { %p157_p1 = scmp.eq.s32.totalorder %s156_s29, 0  ;;  %p170_p2 = scmp.eq.s32.totalorder %s1873_s25, 1 }
   0xc   : > { %p175_p3 = scmp.ne.s32.totalorder %s1797_s22, %s1793_s21  ;;  %p176_p4 = scmp.eq.s32.totalorder %s1347_s26, 1 }
   0xd   : > { %s1888_s30 = scalar_select %p157_p1, %s1801_s23, %s159_s28  }
   0xe   : > { %p1890_p5 = por %p170_p2, %p169_p0  ;;  %p1894_p6 = por %p176_p4, %p175_p3 }
   0xf   : > { %2099 = sst [smem:[#allocation12_spill]] %s1888_s30  ;;  %p1348_p7 = scmp.ge.s32.totalorder %s1805_s24, 1 }
  0x10   : > { %p183_p8 = scmp.lt.s32.totalorder %s1805_s24, 3  ;;  %p1556_p9 = scmp.eq.s32.totalorder %s1873_s25, 0 }
  0x11   : > { %s2103_s3 = sld [smem:[#allocation14_spill]]  ;;  %s1807_s13 = smov [#allocation5]  }
  0x12   : > { %p1901_p10 = pnand %p1348_p7, %p183_p8  ;;  %s213_s14 = sshll.u32 %s1807_s13, 4  ;;  %s214_s14 = int_to_ptr.vmem [resolvable:$true] %s213_s14 }
  0x13   : > { %s2105_s2 = sld [smem:[#allocation13_spill]]  ;;  %s1808_s19 = smov 16  }
  0x14   : > { %p1542_p11 = pneg %p1901_p10  ;;  %s1809_s20 = smov 1  }
  0x15   : > { %s1810_s26 = smov [#allocation2]   ;;  %s1811_s29 = smov 64  }
  0x16   : > { %p1912_p12 = pnand %p1556_p9, %p1542_p11  ;;  %s199_s28 = sshll.u32 %s1810_s26, 4  ;;  %s200_s28 = int_to_ptr.vmem [resolvable:$true] %s199_s28 }
  0x17   : > { %s211_s12 = sshll.u32 %s2103_s3, 4  ;;  %s1812_s10 = smov 4   ;;  %s212_s12 = int_to_ptr.hbm [resolvable:$true] %s211_s12 }
  0x18   : > { %1548 = dma.hbm_to_vmem [thread:$0]  (!%p1912_p12), %s212_s12, 320, %s214_s14, [#allocation6], %s1808_s19, %s1808_s19, %s1809_s20  }
  0x19   : > { %s197_s18 = sshll.u32 %s2105_s2, 4  ;;  %s225_s16 = sshll.u32 %s2094_s4, 4  ;;  %s198_s18 = int_to_ptr.hbm [resolvable:$true] %s197_s18  ;;  %s226_s16 = int_to_ptr.hbm [resolvable:$true] %s225_s16 }
  0x1a   : > { %1545 = dma.hbm_to_vmem [thread:$0]  (!%p1912_p12), %s198_s18, 3584, %s200_s28, [#allocation3], %s1811_s29, %s1811_s29, %s1812_s10  }
  0x1b   : > { %s1813_s17 = smov [#allocation7]   ;;  %s1814_s3 = smov 128  }
  0x1c   : > { %s227_s2 = sshll.u32 %s1813_s17, 4  ;;  %s1815_s30 = smov 8   ;;  %s228_s2 = int_to_ptr.vmem [resolvable:$true] %s227_s2 }
  0x1d   : > { %1551 = dma.hbm_to_vmem [thread:$0]  (!%p1912_p12), %s226_s16, 512, %s228_s2, [#allocation6], %s1814_s3, %s1814_s3, %s1815_s30  }
  0x1e   : > { %254 = sbr.rel (%p1901_p10) target bundleno = 2574 (0xa0e), region = 44 }
  0x23   : > { %1780 = dma.done.wait (%p1556_p9), [#allocation3], 3584  }
  0x24   : > { %1782 = vsyncadd (%p1556_p9), [#allocation3], 4294963712 }
  0x25   : > { %1784 = dma.done.wait (%p1556_p9), [#allocation6], 832  }
  0x26   : > { %1786 = vsyncadd (%p1556_p9), [#allocation6], 4294966464  ;;  %p295_p13 = scmp.lt.s32.totalorder %s1873_s25, 1  ;;  %v304_v0 = vld [vmem:[%s2091_s1 + $0x8] sm:$0xff]  ;;  %v303_v1 = vld [vmem:[%s2091_s1] sm:$0xff]  ;;  %vm311_vm0 = vcmask 130048  }
  0x27   : > { %332 = vmatpush.msra.mxu0 %v304_v0  ;;  %v1501_v3 = vld [vmem:[#allocation2 + $0x8] sm:$0xff]  ;;  %v1500_v5 = vld [vmem:[#allocation2] sm:$0xff]  ;;  %v1503_v6 = vld [vmem:[#allocation2 + $0x18] sm:$0xff]  ;;  %vm363_vm1 = vcmask 261120   ;;  %s1496_s30 = sshll.u32 %s1873_s25, 3  ;;  %s1755_s16 = scalar_lea.hbm %s2096_s6, 16 }
  0x28   : > { %s296_s12 = scalar_select %p295_p13, %s1873_s25, 1  ;;  %373 = vmatpush.bf16.msra.mxu1 %v1501_v3  ;;  %v1505_v7 = vld [vmem:[#allocation2 + $0x28] sm:$0xff]  ;;  %411 = vmatpush.bf16.msra.mxu2 %v1503_v6  ;;  %v1502_v8 = vld [vmem:[#allocation2 + $0x10] sm:$0xff]  ;;  %v1504_v9 = vld [vmem:[#allocation2 + $0x20] sm:$0xff] }
  0x29   : > { %333 = vmatpush.msra.mxu0 %v303_v1  ;;  %446 = vmatpush.bf16.msra.mxu3 %v1505_v7  ;;  %v1605_v10 = vld [vmem:[%s2091_s1 + $0x10] ss:$0 sm:$0xff]  ;;  %v1607_v19 = vld [vmem:[#allocation5 + $0x1] ss:$0 sm:$0xff]  ;;  %v1608_v20 = vld [vmem:[#allocation5 + $0x2] ss:$0 sm:$0xff]  ;;  %s1252_s15 = scalar_lea.hbm %s2096_s6, %s1496_s30 }
  0x2a   : > { %s1499_s2 = sshll.u32 %s296_s12, 4  ;;  %v1965_v23 = vld [vmem:[#allocation7 + $0x10] sm:$0xff]  ;;  %v1967_v24 = vld [vmem:[#allocation7 + $0x18] sm:$0xff]  ;;  %v1969_v27 = vld [vmem:[#allocation7] sm:$0xff]  ;;  %s1256_s28 = sshll.u32 %s1252_s15, 4  ;;  %s1257_s28 = int_to_ptr.hbm [resolvable:$true] %s1256_s28 }
  0x2b   : > { %s299_s9 = scalar_lea.vmem %s2090_s0, %s1499_s2  ;;  %v1971_v28 = vld [vmem:[#allocation7 + $0x8] sm:$0xff]  ;;  %s292_s2 = sand.u32 1, %s1797_s22  }
  0x2c   : > { %v301_v2 = vld [vmem:[%s299_s9] sm:$0xff]  ;;  %v302_v4 = vld [vmem:[%s299_s9 + $0x8] sm:$0xff]  ;;  %374 = vmatpush.bf16.msra.mxu1 %v1500_v5  ;;  %412 = vmatpush.bf16.msra.mxu2 %v1502_v8  ;;  %s1357_s3 = sshll.u32 %s292_s2, 3  ;;  %s1242_s29 = scalar_lea.sflag [#allocation4], %s292_s2 }
  0x2d   : > { %1360 = vmatmul.msk.f32.vlgmr.msra.gmra.mxu0 %vm311_vm0, %v301_v2  ;;  %447 = vmatpush.bf16.msra.mxu3 %v1504_v9  ;;  %v1606_v42 = vld [vmem:[#allocation5] ss:$0 sm:$0xff]  ;;  %s294_s20 = scalar_lea.vmem [#allocation8], %s1357_s3  ;;  %s1749_s25 = sshra.s32 %s1257_s28, 4  ;;  %s1750_s25 = int_to_ptr.hbm [resolvable:$true] %s1749_s25 }
  0x2e   : > { %s1254_s26 = sshll.u32 %s294_s20, 4  ;;  %s1751_s10 = scalar_lea.hbm %s1750_s25, 8  ;;  %s1255_s26 = int_to_ptr.vmem [resolvable:$true] %s1254_s26 }
  0x2f   : > { %p1752_p0 = scmp.ne.s32.totalorder %s1750_s25, %s1751_s10  ;;  %p1756_p3 = scmp.lt.s32.totalorder %s1750_s25, %s2096_s6 }
  0x30   : > { %p1757_p4 = scmp.lt.s32.totalorder %s1755_s16, %s1751_s10 }
  0x31   : > { %p1753_p1 = pnand %p1752_p0, %p1890_p5 }
  0x32   : > { %p1758_p7 = por %p1757_p4, %p1756_p3 }
  0x33   : > { %p1754_p2 = pneg %p1753_p1 }
  0x35   : > { %1361 = vmatmul.msk.f32.gmra.mxu0 %vm311_vm0, %v302_v4  ;;  %p1759_p8 = pnand %p1758_p7, %p1754_p2 }
  0xaa   : > { %v335_v11 = vpop.f32.mrf.mxu0 }
  0xab   : > { %v1954_v12 = vadd.f32 %v1605_v10, %v335_v11  ;;  %v1816_v11 = vmov 32.0  }
  0xad   : > { %v342_v13 = vpack.c.bf16 %v1954_v12, %v1954_v12 }
  0xaf   : > { %1370 = vmatmul.msk.bf16.vlgmr.msra.gmra.mxu1 %vm363_vm1, %v342_v13 }
  0xb2   : > { %v338_v14 = vpop.f32.mrf.mxu0 }
  0xb3   : > { %v339_v15 = vadd.f32 %v1605_v10, %v338_v14 }
  0xb5   : > { %v1959_v16 = vpack.c.bf16 %v339_v15, %v339_v15 }
  0xb7   : > { %1379 = vmatmul.msk.bf16.vlgmr.msra.gmra.mxu2 %vm363_vm1, %v1959_v16  ;;  %1388 = vmatmul.msk.bf16.vlgmr.msra.gmra.mxu3 %vm363_vm1, %v1959_v16 }
 0x12c   : > { %v376_v17 = vpop.f32.mrf.mxu1 }
 0x12d   : > { %v377_v45 = vadd.f32 %v1606_v42, %v376_v17 }
 0x12f   : > { %v453_v47 = vmul.f32 0.35355338, %v377_v45 }
 0x131   : > { %v454_v48 = vpack.c.bf16 %v453_v47, %v453_v47  ;;  %v1610_v47 = vld [vmem:[#allocation5 + $0x7] ss:$0 sm:$0xff] }
 0x134   : > { %v378_v18 = vpop.f32.mrf.mxu1 }
 0x13a   : > { %v414_v21 = vpop.f32.mrf.mxu2  ;;  %v449_v22 = vpop.f32.mrf.mxu3 }
 0x13b   : > { %v415_v25 = vadd.f32 %v1607_v19, %v414_v21  ;;  %v450_v26 = vadd.f32 %v1608_v20, %v449_v22  ;;  %v1507_v19 = vld [vmem:[#allocation2 + $0x38] sm:$0xff]  ;;  %v1509_v20 = vld [vmem:[#allocation2 + $0x48] sm:$0xff]  ;;  %v1506_v21 = vld [vmem:[#allocation2 + $0x30] sm:$0xff] }
 0x13c   : > { %626 = vmatpush.bf16.msrb.mxu3 %v1507_v19  ;;  %662 = vmatpush.bf16.msrb.mxu1 %v1509_v20  ;;  %v1614_v20 = vld [vmem:[#allocation5 + $0x5] ss:$0 sm:$0xff] }
 0x13d   : > { %v463_v29 = vmul.f32 %v450_v26, %v1965_v23  ;;  %v464_v30 = vmul.f32 %v450_v26, %v1967_v24  ;;  %v457_v31 = vmul.f32 %v415_v25, %v1965_v23  ;;  %v458_v32 = vmul.f32 %v415_v25, %v1967_v24 }
 0x13e   : > { %v461_v35 = vmul.f32 %v450_v26, %v1969_v27  ;;  %v462_v36 = vmul.f32 %v450_v26, %v1971_v28  ;;  %v455_v38 = vmul.f32 %v415_v25, %v1969_v27  ;;  %v456_v39 = vmul.f32 %v415_v25, %v1971_v28 }
 0x13f   : > { %v466_v33 = vpack.c.bf16 %v464_v30, %v463_v29  ;;  %v460_v34 = vpack.c.bf16 %v458_v32, %v457_v31  ;;  %v1517_v32 = vld [vmem:[#allocation2 + $0x88] sm:$0xff] }
 0x140   : > { %v465_v43 = vpack.c.bf16 %v462_v36, %v461_v35  ;;  %v459_v44 = vpack.c.bf16 %v456_v39, %v455_v38  ;;  %627 = vmatpush.bf16.msrb.mxu3 %v1506_v21  ;;  %v1511_v39 = vld [vmem:[#allocation2 + $0x58] sm:$0xff] }
 0x141   : > { %528 = vmatpush.bf16.msrb.mxu2 %v466_v33  ;;  %v474_v37 = vsel %vm363_vm1, %v460_v34, 0  ;;  %v1516_v34 = vld [vmem:[#allocation2 + $0x80] sm:$0xff] }
 0x142   : > { %v416_v40 = vpop.f32.mrf.mxu2  ;;  %v451_v41 = vpop.f32.mrf.mxu3  ;;  %482 = vmatpush.bf16.xpose.msrb.mxu0 %v474_v37  ;;  %v471_v46 = vsel %vm363_vm1, %v459_v44, 0  ;;  %v1609_v44 = vld [vmem:[#allocation5 + $0x6] ss:$0 sm:$0xff] }
 0x145   : > { %529 = vmatpush.bf16.msrb.mxu2 %v465_v43 }
 0x149   : > { %731 = vmatpush.bf16.msra.mxu2 %v1511_v39 }
 0x14a   : > { %483 = vmatpush.bf16.xpose.msrb.mxu0 %v471_v46 }
 0x151   : > { %1389 = vmatmul.msk.bf16.vlgmr.msrb.gmra.mxu0 %vm363_vm1, %v454_v48 }
 0x152   : > { %510 = vmatpush.msra.mxu0 %v1967_v24 }
 0x154   : > { %511 = vmatpush.msra.mxu0 %v1965_v23 }
 0x156   : > { %512 = vmatpush.msra.mxu0 %v1971_v28 }
 0x158   : > { %513 = vmatpush.msra.mxu0 %v1969_v27 }
 0x1ce   : > { %v485_v49 = vpop.f32.mrf.mxu0 }
 0x1cf   : > { %v489_v50 = vsel %vm363_vm1, %v485_v49, -inf }
 0x1d0   : > { %490 = vmax.xlane.f32.xlu0 %v489_v50 }
 0x1d6   : > { %v487_v51 = vpop.f32.mrf.mxu0 }
 0x1d7   : > { %v1513_v51 = vld [vmem:[#allocation2 + $0x68] sm:$0xff] }
 0x1d8   : > { %703 = vmatpush.bf16.msrb.mxu0 %v1513_v51 }
 0x243   : > { %v491_v52 = vpop.xlane.xlu0 %490 }
 0x244   : > { %v492_v53 = vsub.f32 %v485_v49, %v491_v52  ;;  %v1512_v52 = vld [vmem:[#allocation2 + $0x60] sm:$0xff] }
 0x245   : > { %704 = vmatpush.bf16.msrb.mxu0 %v1512_v52 }
 0x246   : > { %v493_v54 = vmul.f32 1.442695, %v492_v53  ;;  %v1510_v53 = vld [vmem:[#allocation2 + $0x50] sm:$0xff] }
 0x247   : > { %732 = vmatpush.bf16.msra.mxu2 %v1510_v53 }
 0x248   : > { %1627 = vpow2.f32 %v493_v54  ;;  %v1519_v54 = vld [vmem:[#allocation2 + $0x98] sm:$0xff] }
 0x24e   : > { %v1628_v55 = vpop.eup %1627 }
 0x24f   : > { %1390 = vmatmul.msk.f32.vlgmr.msra.gmra.mxu0 %vm363_vm1, %v1628_v55  ;;  %v518_v56 = vpack.c.bf16 %v1628_v55, %v1628_v55  ;;  %v1518_v55 = vld [vmem:[#allocation2 + $0x90] sm:$0xff] }
 0x250   : > { %883 = vmatpush.bf16.msra.mxu0 %v1519_v54 }
 0x251   : > { %1391 = vmatmul.msk.bf16.vlgmr.msrb.gmra.mxu2 %vm363_vm1, %v518_v56  ;;  %v1611_v56 = vld [vmem:[#allocation5 + $0x4] ss:$0 sm:$0xff] }
 0x254   : > { %884 = vmatpush.bf16.msra.mxu0 %v1518_v55 }
 0x2cc   : > { %v515_v57 = vpop.f32.mrf.mxu0 }
 0x2cd   : > { %1629 = vrcp.f32 %v515_v57  ;;  %v546_v62 = vand.u32 2147483648, %v515_v57  ;;  %v544_v0 = vand.u32 2147483647, %v515_v57  ;;  %vm540_vm3 = vweird.f32 %v515_v57 }
 0x2ce   : > { %1631 = vrcp.f32 %v1816_v11 }
 0x2cf   : > { %v547_v2 = vor.u32 1.1754944e-38, %v546_v62  ;;  %vm545_vm5 = vcmp.eq.f32.partialorder %v544_v0, 8.507059e+37 }
 0x2d3   : > { %v1630_v58 = vpop.eup %1629 }
 0x2d4   : > { %v536_v59 = vmul.f32 %v1630_v58, %v515_v57  ;;  %v531_v60 = vpop.f32.mrf.mxu2  ;;  %vm541_vm2 = vweird.f32 %v1630_v58  ;;  %v1632_v13 = vpop.eup %1631 }
 0x2d5   : > { %vm542_vm4 = vmor %vm540_vm3, %vm541_vm2  ;;  %v559_v14 = vmul.f32 32.0, %v1632_v13  ;;  %vm563_vm6 = vweird.f32 %v1632_v13 }
 0x2d6   : > { %v537_v61 = vsub.f32 1.0, %v536_v59 }
 0x2d7   : > { %v560_v15 = vsub.f32 1.0, %v559_v14 }
 0x2d8   : > { %v538_v63 = vmul.f32 %v1630_v58, %v537_v61 }
 0x2d9   : > { %v561_v17 = vmul.f32 %v1632_v13, %v560_v15 }
 0x2da   : > { %v539_v1 = vadd.f32 %v1630_v58, %v538_v63 }
 0x2db   : > { %v562_v18 = vadd.f32 %v1632_v13, %v561_v17 }
 0x2dc   : > { %v543_v3 = vsel %vm542_vm4, %v1630_v58, %v539_v1  ;;  %v533_v4 = vpop.f32.mrf.mxu2 }
 0x2dd   : > { %v548_v5 = vsel %vm545_vm5, %v547_v2, %v543_v3  ;;  %v1994_v22 = vsel %vm563_vm6, %v1632_v13, %v562_v18  ;;  %v1613_v3 = vld [vmem:[#allocation5 + $0xb] ss:$0 sm:$0xff] }
 0x2de   : > { %v549_v6 = vmul.f32 %v548_v5, %v531_v60  ;;  %v1612_v60 = vld [vmem:[#allocation5 + $0x3] ss:$0 sm:$0xff] }
 0x2e0   : > { %v550_v7 = vadd.f32 %v549_v6, %v1954_v12  ;;  %v1508_v12 = vld [vmem:[#allocation2 + $0x40] sm:$0xff] }
 0x2e1   : > { %663 = vmatpush.bf16.msrb.mxu1 %v1508_v12 }
 0x2e2   : > { %v555_v8 = vsel %vm363_vm1, %v550_v7, 0.0  ;;  %v566_v9 = vmul.f32 %v550_v7, %v550_v7 }
 0x2e3   : > { %556 = vadd.xlane.f32.xlu0 %v555_v8 }
 0x2e4   : > { %v567_v10 = vsel %vm363_vm1, %v566_v9, 0.0 }
 0x2e5   : > { %568 = vadd.xlane.f32.xlu1 %v567_v10  ;;  %848 = vmatpush.bf16.msra.mxu1 %v1517_v32 }
 0x2e9   : > { %849 = vmatpush.bf16.msra.mxu1 %v1516_v34 }
 0x356   : > { %v557_v25 = vpop.xlane.xlu0 %556 }
 0x357   : > { %v565_v26 = vmul.f32 %v1994_v22, %v557_v25  ;;  %v1615_v25 = vld [vmem:[#allocation5 + $0xc] ss:$0 sm:$0xff] }
 0x358   : > { %v569_v29 = vpop.xlane.xlu1 %568 }
 0x359   : > { %v571_v30 = vmul.f32 %v565_v26, %v565_v26  ;;  %v570_v31 = vmul.f32 %v569_v29, %v1994_v22  ;;  %v573_v43 = vsub.f32 %v550_v7, %v565_v26 }
 0x35b   : > { %v572_v33 = vsub.f32 %v570_v31, %v571_v30 }
 0x35d   : > { %v574_v35 = vadd.f32 1e-05, %v572_v33 }
 0x35f   : > { %1633 = vrsqrt.f32 %v574_v35  ;;  %vm581_vm8 = vweird.f32 %v574_v35 }
 0x365   : > { %v1634_v36 = vpop.eup %1633 }
 0x366   : > { %v576_v37 = vmul.f32 %v1634_v36, %v574_v35  ;;  %vm582_vm7 = vweird.f32 %v1634_v36 }
 0x367   : > { %vm583_vm9 = vmor %vm581_vm8, %vm582_vm7 }
 0x368   : > { %v577_v38 = vmul.f32 %v1634_v36, %v576_v37 }
 0x36a   : > { %v578_v40 = vmul.f32 0.5, %v577_v38 }
 0x36c   : > { %v579_v41 = vsub.f32 1.5, %v578_v40 }
 0x36e   : > { %v580_v42 = vmul.f32 %v1634_v36, %v579_v41 }
 0x370   : > { %v584_v45 = vsel %vm583_vm9, %v1634_v36, %v580_v42  ;;  %v1515_v42 = vld [vmem:[#allocation2 + $0x78] sm:$0xff] }
 0x371   : > { %v585_v46 = vmul.f32 %v584_v45, %v573_v43  ;;  %813 = vmatpush.bf16.msra.mxu3 %v1515_v42  ;;  %v1514_v43 = vld [vmem:[#allocation2 + $0x70] sm:$0xff] }
 0x373   : > { %v589_v48 = vmul.f32 %v1609_v44, %v585_v46 }
 0x375   : > { %v593_v49 = vadd.f32 %v1610_v47, %v589_v48  ;;  %814 = vmatpush.bf16.msra.mxu3 %v1514_v43  ;;  %v1527_v43 = vld [vmem:[#allocation2 + $0xd8] sm:$0xff] }
 0x377   : > { %v594_v50 = vpack.c.bf16 %v593_v49, %v593_v49 }
 0x379   : > { %1400 = vmatmul.msk.bf16.vlgmr.msrb.gmra.mxu3 %vm363_vm1, %v594_v50  ;;  %1409 = vmatmul.msk.bf16.vlgmr.msrb.gmra.mxu1 %vm363_vm1, %v594_v50 }
 0x37a   : > { %947 = vmatpush.msrb.mxu3 %v1967_v24 }
 0x37c   : > { %948 = vmatpush.msrb.mxu3 %v1965_v23 }
 0x37e   : > { %949 = vmatpush.msrb.mxu3 %v1971_v28 }
 0x380   : > { %950 = vmatpush.msrb.mxu3 %v1969_v27 }
 0x389   : > { %1445 = vmatmul.msk.bf16.vlgmr.msra.gmra.mxu1 %vm363_vm1, %v1959_v16 }
 0x3f6   : > { %v665_v57 = vpop.f32.mrf.mxu1 }
 0x3f7   : > { %v666_v58 = vadd.f32 %v1611_v56, %v665_v57  ;;  %v1616_v57 = vld [vmem:[#allocation5 + $0x8] ss:$0 sm:$0xff] }
 0x3f9   : > { %v669_v59 = vmax.f32 %v666_v58, 0.0 }
 0x3fb   : > { %v676_v61 = vpack.c.bf16 %v669_v59, %v669_v59  ;;  %v1617_v59 = vld [vmem:[#allocation5 + $0x9] ss:$0 sm:$0xff] }
 0x3fc   : > { %v629_v62 = vpop.f32.mrf.mxu3 }
 0x3fd   : > { %v630_v63 = vadd.f32 %v1612_v60, %v629_v62  ;;  %1418 = vmatmul.msk.bf16.vlgmr.msrb.gmra.mxu0 %vm363_vm1, %v676_v61 }
 0x3fe   : > { %v667_v0 = vpop.f32.mrf.mxu1 }
 0x3ff   : > { %v633_v1 = vmax.f32 %v630_v63, 0.0 }
 0x401   : > { %v670_v2 = vpack.c.bf16 %v633_v1, %v633_v1 }
 0x403   : > { %1427 = vmatmul.msk.bf16.vlgmr.msra.gmra.mxu2 %vm363_vm1, %v670_v2 }
 0x404   : > { %v631_v4 = vpop.f32.mrf.mxu3 }
 0x406   : > { %v851_v5 = vpop.f32.mrf.mxu1 }
 0x407   : > { %v852_v6 = vadd.f32 %v1613_v3, %v851_v5 }
 0x409   : > { %v894_v7 = vmul.f32 %v852_v6, %v1965_v23  ;;  %v895_v8 = vmul.f32 %v852_v6, %v1967_v24  ;;  %v892_v11 = vmul.f32 %v852_v6, %v1969_v27  ;;  %v893_v13 = vmul.f32 %v852_v6, %v1971_v28 }
 0x40b   : > { %v897_v9 = vpack.c.bf16 %v895_v8, %v894_v7  ;;  %v896_v15 = vpack.c.bf16 %v893_v13, %v892_v11 }
 0x40d   : > { %1454 = vmatmul.msk.bf16.vlgmr.msra.gmra.mxu0 %vm363_vm1, %v1959_v16  ;;  %v911_v10 = vsel %vm363_vm1, %v897_v9, 0  ;;  %v908_v17 = vsel %vm363_vm1, %v896_v15, 0 }
 0x40e   : > { %v853_v14 = vpop.f32.mrf.mxu1  ;;  %919 = vmatpush.bf16.xpose.msrb.mxu2 %v911_v10 }
 0x416   : > { %920 = vmatpush.bf16.xpose.msrb.mxu2 %v908_v17 }
 0x41e   : > { %1133 = vmatpush.bf16.msra.mxu2 %v1527_v43 }
 0x47a   : > { %v706_v18 = vpop.f32.mrf.mxu0 }
 0x482   : > { %v708_v19 = vpop.f32.mrf.mxu0 }
 0x486   : > { %v734_v21 = vpop.f32.mrf.mxu2 }
 0x487   : > { %v735_v12 = vadd.f32 %v734_v21, %v706_v18 }
 0x489   : > { %v743_v26 = vadd.f32 %v1614_v20, %v735_v12 }
 0x48a   : > { %v886_v16 = vpop.f32.mrf.mxu0 }
 0x48b   : > { %v744_v29 = vadd.f32 %v743_v26, %v593_v49  ;;  %v887_v30 = vadd.f32 %v1615_v25, %v886_v16 }
 0x48d   : > { %v900_v31 = vmul.f32 %v887_v30, %v1965_v23  ;;  %v901_v32 = vmul.f32 %v887_v30, %v1967_v24  ;;  %v749_v33 = vsel %vm363_vm1, %v744_v29, 0.0  ;;  %v753_v34 = vmul.f32 %v744_v29, %v744_v29 }
 0x48e   : > { %v736_v35 = vpop.f32.mrf.mxu2  ;;  %750 = vadd.xlane.f32.xlu1 %v749_v33  ;;  %v898_v38 = vmul.f32 %v887_v30, %v1969_v27  ;;  %v899_v39 = vmul.f32 %v887_v30, %v1971_v28  ;;  %v1618_v27 = vld [vmem:[#allocation5 + $0xa] ss:$0 sm:$0xff] }
 0x48f   : > { %v754_v36 = vsel %vm363_vm1, %v753_v34, 0.0  ;;  %v903_v37 = vpack.c.bf16 %v901_v32, %v900_v31  ;;  %v1523_v34 = vld [vmem:[#allocation2 + $0xb8] sm:$0xff]  ;;  %v1521_v35 = vld [vmem:[#allocation2 + $0xa8] sm:$0xff] }
 0x490   : > { %755 = vadd.xlane.f32.xlu2 %v754_v36  ;;  %v902_v41 = vpack.c.bf16 %v899_v39, %v898_v38  ;;  %1092 = vmatpush.bf16.msrb.mxu0 %v1523_v34  ;;  %v1522_v36 = vld [vmem:[#allocation2 + $0xb0] sm:$0xff] }
 0x491   : > { %965 = vmatpush.bf16.msrb.mxu1 %v903_v37  ;;  %v1520_v37 = vld [vmem:[#allocation2 + $0xa0] sm:$0xff] }
 0x492   : > { %v888_v40 = vpop.f32.mrf.mxu0 }
 0x494   : > { %1093 = vmatpush.bf16.msrb.mxu0 %v1522_v36 }
 0x495   : > { %966 = vmatpush.bf16.msrb.mxu1 %v902_v41 }
 0x501   : > { %v751_v44 = vpop.xlane.xlu1 %750 }
 0x502   : > { %v752_v45 = vmul.f32 %v751_v44, %v1994_v22  ;;  %v1525_v44 = vld [vmem:[#allocation2 + $0xc8] sm:$0xff] }
 0x503   : > { %v756_v46 = vpop.xlane.xlu2 %755  ;;  %1161 = vmatpush.bf16.msra.mxu1 %v1525_v44  ;;  %v1625_v44 = vld [vmem:[#allocation5 + $0x13] ss:$0 sm:$0xff] }
 0x504   : > { %v758_v47 = vmul.f32 %v752_v45, %v752_v45  ;;  %v757_v48 = vmul.f32 %v756_v46, %v1994_v22  ;;  %v760_v24 = vsub.f32 %v744_v29, %v752_v45 }
 0x506   : > { %v759_v49 = vsub.f32 %v757_v48, %v758_v47 }
 0x508   : > { %v761_v50 = vadd.f32 1e-05, %v759_v49 }
 0x50a   : > { %1635 = vrsqrt.f32 %v761_v50  ;;  %vm768_vm11 = vweird.f32 %v761_v50 }
 0x510   : > { %v1636_v51 = vpop.eup %1635 }
 0x511   : > { %v763_v52 = vmul.f32 %v1636_v51, %v761_v50  ;;  %vm769_vm10 = vweird.f32 %v1636_v51 }
 0x512   : > { %vm770_vm12 = vmor %vm768_vm11, %vm769_vm10 }
 0x513   : > { %v764_v53 = vmul.f32 %v1636_v51, %v763_v52 }
 0x515   : > { %v765_v54 = vmul.f32 0.5, %v764_v53 }
 0x517   : > { %v766_v55 = vsub.f32 1.5, %v765_v54  ;;  %v1619_v54 = vld [vmem:[#allocation5 + $0x10] ss:$0 sm:$0xff] }
 0x519   : > { %v767_v56 = vmul.f32 %v1636_v51, %v766_v55 }
 0x51b   : > { %v771_v58 = vsel %vm770_vm12, %v1636_v51, %v767_v56 }
 0x51c   : > { %v772_v23 = vmul.f32 %v771_v58, %v760_v24  ;;  %v1620_v24 = vld [vmem:[#allocation5 + $0x11] ss:$0 sm:$0xff] }
 0x51e   : > { %v776_v60 = vmul.f32 %v1616_v57, %v772_v23 }
 0x520   : > { %v780_v28 = vadd.f32 %v1617_v59, %v776_v60  ;;  %v1526_v59 = vld [vmem:[#allocation2 + $0xd0] sm:$0xff]  ;;  %v1524_v60 = vld [vmem:[#allocation2 + $0xc0] sm:$0xff] }
 0x521   : > { %1134 = vmatpush.bf16.msra.mxu2 %v1526_v59  ;;  %1162 = vmatpush.bf16.msra.mxu1 %v1524_v60 }
 0x522   : > { %v781_v61 = vpack.c.bf16 %v780_v28, %v780_v28 }
 0x524   : > { %1436 = vmatmul.msk.bf16.vlgmr.msra.gmra.mxu3 %vm363_vm1, %v781_v61 }
 0x525   : > { %1056 = vmatpush.bf16.msra.mxu3 %v1521_v35 }
 0x529   : > { %1057 = vmatpush.bf16.msra.mxu3 %v1520_v37 }
 0x5a7   : > { %v816_v62 = vpop.f32.mrf.mxu3 }
 0x5a8   : > { %v817_v63 = vadd.f32 %v1618_v27, %v816_v62 }
 0x5aa   : > { %v890_v0 = vmul.f32 0.35355338, %v817_v63  ;;  %v1622_v63 = vld [vmem:[#allocation5 + $0xd] ss:$0 sm:$0xff] }
 0x5ac   : > { %v891_v1 = vpack.c.bf16 %v890_v0, %v890_v0 }
 0x5ae   : > { %1455 = vmatmul.msk.bf16.vlgmr.msrb.gmra.mxu2 %vm363_vm1, %v891_v1 }
 0x5af   : > { %v818_v2 = vpop.f32.mrf.mxu3 }
 0x631   : > { %v922_v3 = vpop.f32.mrf.mxu2 }
 0x632   : > { %v926_v4 = vsel %vm363_vm1, %v922_v3, -inf }
 0x633   : > { %927 = vmax.xlane.f32.xlu2 %v926_v4 }
 0x639   : > { %v924_v5 = vpop.f32.mrf.mxu2 }
 0x6a6   : > { %v928_v6 = vpop.xlane.xlu2 %927 }
 0x6a7   : > { %v929_v7 = vsub.f32 %v922_v3, %v928_v6 }
 0x6a9   : > { %v930_v8 = vmul.f32 1.442695, %v929_v7  ;;  %v1623_v7 = vld [vmem:[#allocation5 + $0xf] ss:$0 sm:$0xff] }
 0x6ab   : > { %1637 = vpow2.f32 %v930_v8 }
 0x6b1   : > { %v1638_v9 = vpop.eup %1637 }
 0x6b2   : > { %v955_v10 = vpack.c.bf16 %v1638_v9, %v1638_v9  ;;  %1456 = vmatmul.msk.f32.vlgmr.msrb.gmra.mxu3 %vm363_vm1, %v1638_v9 }
 0x6b4   : > { %1457 = vmatmul.msk.bf16.vlgmr.msrb.gmra.mxu1 %vm363_vm1, %v955_v10 }
 0x731   : > { %v968_v11 = vpop.f32.mrf.mxu1 }
 0x735   : > { %v952_v13 = vpop.f32.mrf.mxu3 }
 0x736   : > { %1639 = vrcp.f32 %v952_v13  ;;  %v983_v19 = vand.u32 2147483648, %v952_v13  ;;  %v981_v21 = vand.u32 2147483647, %v952_v13  ;;  %vm977_vm14 = vweird.f32 %v952_v13 }
 0x738   : > { %v984_v25 = vor.u32 1.1754944e-38, %v983_v19  ;;  %vm982_vm2 = vcmp.eq.f32.partialorder %v981_v21, 8.507059e+37  ;;  %v1213_v21 = vld [vmem:[%s2095_s5 + $0x10] sm:$0xff] }
 0x739   : > { %v970_v14 = vpop.f32.mrf.mxu1 }
 0x73c   : > { %v1640_v15 = vpop.eup %1639 }
 0x73d   : > { %v973_v17 = vmul.f32 %v1640_v15, %v952_v13  ;;  %vm978_vm13 = vweird.f32 %v1640_v15 }
 0x73e   : > { %vm979_vm15 = vmor %vm977_vm14, %vm978_vm13 }
 0x73f   : > { %v974_v18 = vsub.f32 1.0, %v973_v17 }
 0x741   : > { %v975_v20 = vmul.f32 %v1640_v15, %v974_v18 }
 0x743   : > { %v976_v12 = vadd.f32 %v1640_v15, %v975_v20  ;;  %v1214_v20 = vld [vmem:[%s2095_s5 + $0x18] sm:$0xff] }
 0x744   : > { %1232 = vmatpush.msrb.mxu3 %v1214_v20 }
 0x745   : > { %v980_v26 = vsel %vm979_vm15, %v1640_v15, %v976_v12  ;;  %v1212_v12 = vld [vmem:[%s2095_s5 + $0x8] sm:$0xff] }
 0x746   : > { %v985_v16 = vsel %vm982_vm2, %v984_v25, %v980_v26  ;;  %1233 = vmatpush.msrb.mxu3 %v1213_v21  ;;  %v1211_v25 = vld [vmem:[%s2095_s5] sm:$0xff] }
 0x747   : > { %v986_v29 = vmul.f32 %v985_v16, %v968_v11 }
 0x748   : > { %1234 = vmatpush.msrb.mxu3 %v1212_v12 }
 0x749   : > { %v987_v30 = vadd.f32 %v986_v29, %v780_v28  ;;  %v1621_v28 = vld [vmem:[#allocation5 + $0xe] ss:$0 sm:$0xff] }
 0x74a   : > { %1235 = vmatpush.msrb.mxu3 %v1211_v25 }
 0x74b   : > { %v992_v31 = vsel %vm363_vm1, %v987_v30, 0.0  ;;  %v996_v32 = vmul.f32 %v987_v30, %v987_v30 }
 0x74c   : > { %993 = vadd.xlane.f32.xlu0 %v992_v31 }
 0x74d   : > { %v997_v33 = vsel %vm363_vm1, %v996_v32, 0.0 }
 0x74e   : > { %998 = vadd.xlane.f32.xlu1 %v997_v33 }
 0x7bf   : > { %v994_v38 = vpop.xlane.xlu0 %993 }
 0x7c0   : > { %v995_v39 = vmul.f32 %v994_v38, %v1994_v22 }
 0x7c1   : > { %v999_v40 = vpop.xlane.xlu1 %998 }
 0x7c2   : > { %v1001_v41 = vmul.f32 %v995_v39, %v995_v39  ;;  %v1000_v42 = vmul.f32 %v999_v40, %v1994_v22  ;;  %v1003_v53 = vsub.f32 %v987_v30, %v995_v39 }
 0x7c4   : > { %v1002_v45 = vsub.f32 %v1000_v42, %v1001_v41  ;;  %v1624_v41 = vld [vmem:[#allocation5 + $0x12] ss:$0 sm:$0xff] }
 0x7c6   : > { %v1004_v46 = vadd.f32 1e-05, %v1002_v45 }
 0x7c8   : > { %1641 = vrsqrt.f32 %v1004_v46  ;;  %vm1011_vm4 = vweird.f32 %v1004_v46 }
 0x7ce   : > { %v1642_v47 = vpop.eup %1641 }
 0x7cf   : > { %v1006_v48 = vmul.f32 %v1642_v47, %v1004_v46  ;;  %vm1012_vm3 = vweird.f32 %v1642_v47  ;;  %v1626_v46 = vld [vmem:[%s2095_s5 + $0x20] ss:$0 sm:$0xff] }
 0x7d0   : > { %vm1013_vm5 = vmor %vm1011_vm4, %vm1012_vm3 }
 0x7d1   : > { %v1007_v49 = vmul.f32 %v1642_v47, %v1006_v48 }
 0x7d3   : > { %v1008_v50 = vmul.f32 0.5, %v1007_v49 }
 0x7d5   : > { %v1009_v51 = vsub.f32 1.5, %v1008_v50 }
 0x7d7   : > { %v1010_v52 = vmul.f32 %v1642_v47, %v1009_v51 }
 0x7d9   : > { %v1014_v55 = vsel %vm1013_vm5, %v1642_v47, %v1010_v52 }
 0x7da   : > { %v1015_v56 = vmul.f32 %v1014_v55, %v1003_v53 }
 0x7dc   : > { %v1019_v57 = vmul.f32 %v1619_v54, %v1015_v56 }
 0x7de   : > { %v1023_v58 = vadd.f32 %v1620_v24, %v1019_v57 }
 0x7e0   : > { %v1024_v23 = vpack.c.bf16 %v1023_v58, %v1023_v58 }
 0x7e2   : > { %1466 = vmatmul.msk.bf16.vlgmr.msra.gmra.mxu3 %vm363_vm1, %v1024_v23  ;;  %1475 = vmatmul.msk.bf16.vlgmr.msrb.gmra.mxu0 %vm363_vm1, %v1024_v23 }
 0x85f   : > { %v1095_v61 = vpop.f32.mrf.mxu0 }
 0x860   : > { %v1096_v27 = vadd.f32 %v1621_v28, %v1095_v61 }
 0x862   : > { %v1099_v62 = vmax.f32 %v1096_v27, 0.0 }
 0x864   : > { %v1106_v0 = vpack.c.bf16 %v1099_v62, %v1099_v62 }
 0x865   : > { %v1059_v1 = vpop.f32.mrf.mxu3 }
 0x866   : > { %v1060_v2 = vadd.f32 %v1622_v63, %v1059_v1  ;;  %1484 = vmatmul.msk.bf16.vlgmr.msra.gmra.mxu2 %vm363_vm1, %v1106_v0 }
 0x867   : > { %v1097_v3 = vpop.f32.mrf.mxu0 }
 0x868   : > { %v1063_v4 = vmax.f32 %v1060_v2, 0.0 }
 0x86a   : > { %v1100_v5 = vpack.c.bf16 %v1063_v4, %v1063_v4 }
 0x86c   : > { %1493 = vmatmul.msk.bf16.vlgmr.msra.gmra.mxu1 %vm363_vm1, %v1100_v5 }
 0x86d   : > { %v1061_v6 = vpop.f32.mrf.mxu3 }
 0x8e9   : > { %v1136_v8 = vpop.f32.mrf.mxu2  ;;  %v1164_v9 = vpop.f32.mrf.mxu1 }
 0x8ea   : > { %v1165_v10 = vadd.f32 %v1164_v9, %v1136_v8 }
 0x8ec   : > { %v1173_v11 = vadd.f32 %v1623_v7, %v1165_v10 }
 0x8ee   : > { %v1174_v13 = vadd.f32 %v1173_v11, %v1023_v58 }
 0x8f0   : > { %v1179_v14 = vsel %vm363_vm1, %v1174_v13, 0.0  ;;  %v1183_v15 = vmul.f32 %v1174_v13, %v1174_v13 }
 0x8f1   : > { %v1166_v17 = vpop.f32.mrf.mxu1  ;;  %1180 = vadd.xlane.f32.xlu2 %v1179_v14  ;;  %v1138_v18 = vpop.f32.mrf.mxu2 }
 0x8f2   : > { %v1184_v19 = vsel %vm363_vm1, %v1183_v15, 0.0 }
 0x8f3   : > { %1185 = vadd.xlane.f32.xlu0 %v1184_v19 }
 0x964   : > { %v1181_v26 = vpop.xlane.xlu2 %1180 }
 0x965   : > { %v1182_v16 = vmul.f32 %v1181_v26, %v1994_v22 }
 0x966   : > { %v1186_v29 = vpop.xlane.xlu0 %1185 }
 0x967   : > { %v1188_v30 = vmul.f32 %v1182_v16, %v1182_v16  ;;  %v1187_v31 = vmul.f32 %v1186_v29, %v1994_v22  ;;  %v1190_v40 = vsub.f32 %v1174_v13, %v1182_v16 }
 0x969   : > { %v1189_v32 = vsub.f32 %v1187_v31, %v1188_v30 }
 0x96b   : > { %v1191_v33 = vadd.f32 1e-05, %v1189_v32 }
 0x96d   : > { %1643 = vrsqrt.f32 %v1191_v33  ;;  %vm1198_vm7 = vweird.f32 %v1191_v33 }
 0x973   : > { %v1644_v34 = vpop.eup %1643 }
 0x974   : > { %v1193_v35 = vmul.f32 %v1644_v34, %v1191_v33  ;;  %vm1199_vm6 = vweird.f32 %v1644_v34 }
 0x975   : > { %vm1200_vm8 = vmor %vm1198_vm7, %vm1199_vm6 }
 0x976   : > { %v1194_v36 = vmul.f32 %v1644_v34, %v1193_v35 }
 0x978   : > { %v1195_v37 = vmul.f32 0.5, %v1194_v36 }
 0x97a   : > { %v1196_v38 = vsub.f32 1.5, %v1195_v37 }
 0x97c   : > { %v1197_v39 = vmul.f32 %v1644_v34, %v1196_v38 }
 0x97e   : > { %v1201_v42 = vsel %vm1200_vm8, %v1644_v34, %v1197_v39 }
 0x97f   : > { %v1202_v43 = vmul.f32 %v1201_v42, %v1190_v40 }
 0x981   : > { %v1206_v22 = vmul.f32 %v1624_v41, %v1202_v43 }
 0x983   : > { %v1210_v45 = vadd.f32 %v1625_v44, %v1206_v22 }
 0x985   : > { %1494 = vmatmul.msk.f32.vlgmr.msrb.gmra.mxu3 %vm363_vm1, %v1210_v45 }
 0xa08   : > { %v1237_v47 = vpop.f32.mrf.mxu3 }
 0xa09   : > { %v1238_v48 = vadd.f32 %v1626_v46, %v1237_v47 }
 0xa0b   : > { %1240 = vst.msk [vmem:[%s294_s20] sm:$0xff] %vm311_vm0, %v1238_v48 }
 0xa0c   : > { %1762 = shalt.err (!%p1759_p8)
}
 0xa0d   : > { %1540 = dma.vmem_to_hbm [thread:$0]  (%p1890_p5), %s1255_s26, 128, %s1257_s28, %s1242_s29  }
 0xa0e PF: > { %p1562_p9 = scmp.ge.s32.totalorder %s1805_s24, 2  ;;  %s1268_s2 = sand.u32 1, %s1793_s21  }
 0xa0f   : > { %s1269_s3 = scalar_lea.sflag [#allocation4], %s1268_s2 }
 0xa10   : > { %p1553_p10 = pnand %p1562_p9, %p1894_p6 }
 0xa12   : > { %p1554_p11 = pneg %p1553_p10 }
 0xa14   : > { %1788 = dma.done.wait (%p1554_p11), %s1269_s3, 128  }
 0xa15   : > { %1790 = vsyncadd (%p1554_p11), %s1269_s3, 4294967168  ;;  %s2106_s30 = sld [smem:[#allocation12_spill]]  ;;  %p18_p12 = scmp.ge.s32.totalorder %s1877_s27, 4  }
 0xa16   : > { %s2107_s21 = smov %s1797_s22  ;;  %s2108_s22 = smov %s1801_s23 }
 0xa17   : > { %s2110_s24 = smov %s1877_s27  ;;  %20 = sbr.rel (!%p18_p12) target bundleno = 8 (0x8), region = 124 }
 0xa1b   : > { %s2109_s23 = smov %s2106_s30 }
 0xa1c   :  { %1275 = vsyncpa [#allocation3], 1 }
 0xa1d   :  { %1277 = vsyncpa [#allocation3 + $0x1], 1 }
 0xa1e   :  { %1278 = vsyncpa [#allocation6], 1 }
 0xa1f   :  { %1279 = vsyncpa [#allocation4], 1 }
 0xa20   :  { %1281 = vsyncpa [#allocation4 + $0x1], 1 }

</bundles_post_ra>
